<compile_context>
chip_gen: v7x
topology: tpu7x:2x2x1
jax: 0.10.0
libtpu: 0.0.40
codegen_flags: <defaults>
</compile_context>

<pallas_src>
import math
from functools import partial

import jax
import jax.numpy as jnp
from jax.experimental import pallas as pl
from jax.experimental.pallas import tpu as pltpu


# ---------------------------------------------------------------------------
# Fused MHA kernel: one grid step == one batch element, all heads.
#   xq : (1, Lq, D)    xk, xv : (1, Lk, D)
#   wq/wk/wv : (D, D)  bq/bk/bv : (1, D)
#   ctx : (1, Lq, D)   attn : (H, 1, Lq, Lk)
# ---------------------------------------------------------------------------
def _mha_kernel(xq_ref, xk_ref, xv_ref,
                wq_ref, wk_ref, wv_ref,
                bq_ref, bk_ref, bv_ref,
                ctx_ref, attn_ref, *, num_heads, scale):
    xq = xq_ref[0]            # (Lq, D)
    xk = xk_ref[0]            # (Lk, D)
    xv = xv_ref[0]            # (Lk, D)

    # Q/K/V projections with bias folded in (f32 MXU accumulation).
    # Fold the 1/sqrt(d_head) scale into q once (O(Lq*D)) instead of scaling
    # every (Lq, Lk) score matrix.
    q = (jnp.dot(xq, wq_ref[...], preferred_element_type=jnp.float32)
         + bq_ref[...]) * scale                                   # (Lq, D)
    k = jnp.dot(xk, wk_ref[...], preferred_element_type=jnp.float32) + bk_ref[...]
    v = jnp.dot(xv, wv_ref[...], preferred_element_type=jnp.float32) + bv_ref[...]

    d_model = q.shape[-1]
    d_head = d_model // num_heads

    # Per-head QK^T (contract last dims -> no kh.T materialization), stacked so
    # the softmax runs ONCE over all heads.
    s_list = []
    for h in range(num_heads):
        sl = slice(h * d_head, (h + 1) * d_head)
        s_list.append(jax.lax.dot_general(
            q[:, sl], k[:, sl], (((1,), (1,)), ((), ())),
            preferred_element_type=jnp.float32))                  # (Lq, Lk)
    s = jnp.stack(s_list, axis=0)                                 # (H, Lq, Lk)

    # Numerically-stable softmax over all heads at once; reciprocal -> EUP slot.
    m = jnp.max(s, axis=-1, keepdims=True)
    e = jnp.exp(s - m)
    denom = jnp.sum(e, axis=-1, keepdims=True)
    p = e * pl.reciprocal(denom, approx=True)                     # (H, Lq, Lk)

    # Context per head, written directly into the final (B, Lq, H*d) layout:
    # head h occupies columns [h*d : (h+1)*d] of the lane-dense (1, Lq, D) block.
    for h in range(num_heads):
        sl = slice(h * d_head, (h + 1) * d_head)
        ctx_h = jnp.dot(p[h], v[:, sl], preferred_element_type=jnp.float32)
        ctx_ref[0, :, sl] = ctx_h.astype(ctx_ref.dtype)

    # Single full-block store of the attention probabilities.
    lq_len, lk_len = p.shape[1], p.shape[2]
    attn_ref[...] = p.reshape(num_heads, 1, lq_len, lk_len).astype(attn_ref.dtype)


# ---------------------------------------------------------------------------
# MultiHeadAttention forward (mask=None)
# ---------------------------------------------------------------------------
def multi_head_attention(params, query, key, value, num_heads):
    """query: (B, Lq, D), key/value: (B, Lk, D). Returns (context, attn)."""
    b, lq, d_model = query.shape
    lk = key.shape[1]
    assert d_model % num_heads == 0
    d_head = d_model // num_heads
    scale = 1.0 / math.sqrt(d_head)

    kernel = partial(_mha_kernel, num_heads=num_heads, scale=scale)

    grid_spec = pltpu.PrefetchScalarGridSpec(
        num_scalar_prefetch=0,
        grid=(b,),
        in_specs=[
            pl.BlockSpec((1, lq, d_model), lambda i: (i, 0, 0)),   # query
            pl.BlockSpec((1, lk, d_model), lambda i: (i, 0, 0)),   # key
            pl.BlockSpec((1, lk, d_model), lambda i: (i, 0, 0)),   # value
            pl.BlockSpec((d_model, d_model), lambda i: (0, 0)),    # Wq (resident)
            pl.BlockSpec((d_model, d_model), lambda i: (0, 0)),    # Wk
            pl.BlockSpec((d_model, d_model), lambda i: (0, 0)),    # Wv
            pl.BlockSpec((1, d_model), lambda i: (0, 0)),          # bq
            pl.BlockSpec((1, d_model), lambda i: (0, 0)),          # bk
            pl.BlockSpec((1, d_model), lambda i: (0, 0)),          # bv
        ],
        out_specs=[
            pl.BlockSpec((1, lq, d_model), lambda i: (i, 0, 0)),           # context
            pl.BlockSpec((num_heads, 1, lq, lk), lambda i: (0, i, 0, 0)),  # attn
        ],
    )

    # Advisory cost estimate (flops / bytes) for the XLA scheduler.
    proj_flops = 2 * b * (lq + 2 * lk) * d_model * d_model
    attn_flops = 4 * b * num_heads * lq * lk * d_head
    bytes_accessed = 4 * (b * (lq + 2 * lk) * d_model
                          + 3 * d_model * d_model + 3 * d_model
                          + b * lq * d_model
                          + num_heads * b * lq * lk)
    cost = pl.CostEstimate(flops=proj_flops + attn_flops,
                           transcendentals=b * num_heads * lq * lk,
                           bytes_accessed=bytes_accessed)

    context, attn = pl.pallas_call(
        kernel,
        grid_spec=grid_spec,
        out_shape=(
            jax.ShapeDtypeStruct((b, lq, d_model), query.dtype),
            jax.ShapeDtypeStruct((num_heads, b, lq, lk), jnp.float32),
        ),
        compiler_params=pltpu.CompilerParams(
            dimension_semantics=("parallel",)),
        cost_estimate=cost,
    )(query, key, value,
      params["wq"], params["wk"], params["wv"],
      params["bq"].reshape(1, d_model),
      params["bk"].reshape(1, d_model),
      params["bv"].reshape(1, d_model))

    # (H, B, Lq, Lk) -> (H*B, Lq, Lk): matches torch's head-major flatten.
    return context, attn.reshape(num_heads * b, lq, lk)


# ---------------------------------------------------------------------------
# Deterministic parameter init (mimics nn.Linear uniform(-1/sqrt(in), 1/sqrt(in)))
# ---------------------------------------------------------------------------
def init_params(key, d_model):
    bound = 1.0 / math.sqrt(d_model)
    ks = jax.random.split(key, 6)

    def u(k, shape):
        return jax.random.uniform(k, shape, jnp.float32, -bound, bound)

    return {
        # stored already transposed: (d_in, d_out), so y = x @ W + b
        "wq": u(ks[0], (d_model, d_model)), "bq": u(ks[1], (d_model,)),
        "wk": u(ks[2], (d_model, d_model)), "bk": u(ks[3], (d_model,)),
        "wv": u(ks[4], (d_model, d_model)), "bv": u(ks[5], (d_model,)),
    }


# ---------------------------------------------------------------------------
# Pure-JAX reference (same math) for a correctness check
# ---------------------------------------------------------------------------
def reference_mha(params, query, key, value, num_heads):
    b = value.shape[0]
    d_model = query.shape[-1]
    d_head = d_model // num_heads

    def proj(x, w, bias):
        return x @ w + bias

    def split(x):
        n, l, _ = x.shape
        x = x.reshape(n, l, num_heads, d_head)
        return jnp.transpose(x, (2, 0, 1, 3)).reshape(num_heads * n, l, d_head)

    q = split(proj(query, params["wq"], params["bq"]))
    k = split(proj(key,   params["wk"], params["bk"]))
    v = split(proj(value, params["wv"], params["bv"]))

    s = jnp.einsum("bqd,bkd->bqk", q, k) / math.sqrt(d_head)
    attn = jax.nn.softmax(s, axis=-1)
    ctx = jnp.einsum("bqk,bkd->bqd", attn, v)
    lq = ctx.shape[1]
    ctx = ctx.reshape(num_heads, b, lq, d_head)
    ctx = jnp.transpose(ctx, (1, 2, 0, 3)).reshape(b, lq, num_heads * d_head)
    return ctx, attn


if __name__ == "__main__":
    # Small shapes consistent with the module (d_model divisible by num_heads),
    # chosen so the lane dim (d_model=128) is TPU-friendly.
    batch, q_len, k_len, d_model, num_heads = 2, 16, 16, 128, 4

    root = jax.random.PRNGKey(0)
    kp, kq, kk, kv = jax.random.split(root, 4)
    params = init_params(kp, d_model)

    query = jax.random.normal(kq, (batch, q_len, d_model), jnp.float32)
    key_t = jax.random.normal(kk, (batch, k_len, d_model), jnp.float32)
    value = jax.random.normal(kv, (batch, k_len, d_model), jnp.float32)

    context, attn = multi_head_attention(params, query, key_t, value, num_heads)
    context = jax.block_until_ready(context)
    attn = jax.block_until_ready(attn)

    ref_ctx, ref_attn = reference_mha(params, query, key_t, value, num_heads)

    assert context.shape == (batch, q_len, d_model)
    assert attn.shape == (batch * num_heads, q_len, k_len)
    # Slightly loose tolerance: approx (EUP) reciprocal in the softmax.
    assert jnp.allclose(context, ref_ctx, atol=2e-3, rtol=2e-3)
    assert jnp.allclose(attn, ref_attn, atol=2e-3, rtol=2e-3)

    print("KERNEL_OK")
</pallas_src>

<mosaic_0001>
module attributes {stable_mosaic.version = 11 : i64} {
  func.func @_mha_kernel(%arg0: i32, %arg1: memref<1x16x128xf32, #tpu.memory_space<vmem>>, %arg2: memref<1x16x128xf32, #tpu.memory_space<vmem>>, %arg3: memref<1x16x128xf32, #tpu.memory_space<vmem>>, %arg4: memref<128x128xf32, #tpu.memory_space<vmem>>, %arg5: memref<128x128xf32, #tpu.memory_space<vmem>>, %arg6: memref<128x128xf32, #tpu.memory_space<vmem>>, %arg7: memref<1x128xf32, #tpu.memory_space<vmem>>, %arg8: memref<1x128xf32, #tpu.memory_space<vmem>>, %arg9: memref<1x128xf32, #tpu.memory_space<vmem>>, %arg10: memref<1x16x128xf32, #tpu.memory_space<vmem>>, %arg11: memref<4x1x16x16xf32, #tpu.memory_space<vmem>>) attributes {dimension_semantics = [#tpu.dimension_semantics<parallel>], iteration_bounds = array<i64: 2>, scalar_prefetch = 0 : i64, scratch_operands = 0 : i64, tpu.core_type = #tpu.core_type<tc>, window_params = [{transform_indices = @transform_0, window_bounds = array<i64: 1, 16, 128>}, {transform_indices = @transform_1, window_bounds = array<i64: 1, 16, 128>}, {transform_indices = @transform_2, window_bounds = array<i64: 1, 16, 128>}, {pipeline_mode = #tpu.pipeline_mode<synchronous>, transform_indices = @transform_3, window_bounds = array<i64: 128, 128>}, {pipeline_mode = #tpu.pipeline_mode<synchronous>, transform_indices = @transform_4, window_bounds = array<i64: 128, 128>}, {pipeline_mode = #tpu.pipeline_mode<synchronous>, transform_indices = @transform_5, window_bounds = array<i64: 128, 128>}, {pipeline_mode = #tpu.pipeline_mode<synchronous>, transform_indices = @transform_6, window_bounds = array<i64: 1, 128>}, {pipeline_mode = #tpu.pipeline_mode<synchronous>, transform_indices = @transform_7, window_bounds = array<i64: 1, 128>}, {pipeline_mode = #tpu.pipeline_mode<synchronous>, transform_indices = @transform_8, window_bounds = array<i64: 1, 128>}, {transform_indices = @transform_9, window_bounds = array<i64: 1, 16, 128>}, {transform_indices = @transform_10, window_bounds = array<i64: 4, 1, 16, 16>}]} {
    %c0 = arith.constant 0 : index
    %c0_0 = arith.constant 0 : index
    %c0_1 = arith.constant 0 : index
    %0 = vector.load %arg1[%c0, %c0_0, %c0_1] : memref<1x16x128xf32, #tpu.memory_space<vmem>>, vector<1x16x128xf32>
    %1 = vector.shape_cast %0 : vector<1x16x128xf32> to vector<16x128xf32>
    %c0_2 = arith.constant 0 : index
    %c0_3 = arith.constant 0 : index
    %c0_4 = arith.constant 0 : index
    %2 = vector.load %arg2[%c0_2, %c0_3, %c0_4] : memref<1x16x128xf32, #tpu.memory_space<vmem>>, vector<1x16x128xf32>
    %3 = vector.shape_cast %2 : vector<1x16x128xf32> to vector<16x128xf32>
    %c0_5 = arith.constant 0 : index
    %c0_6 = arith.constant 0 : index
    %c0_7 = arith.constant 0 : index
    %4 = vector.load %arg3[%c0_5, %c0_6, %c0_7] : memref<1x16x128xf32, #tpu.memory_space<vmem>>, vector<1x16x128xf32>
    %5 = vector.shape_cast %4 : vector<1x16x128xf32> to vector<16x128xf32>
    %c0_8 = arith.constant 0 : index
    %c0_9 = arith.constant 0 : index
    %6 = vector.load %arg4[%c0_8, %c0_9] : memref<128x128xf32, #tpu.memory_space<vmem>>, vector<128x128xf32>
    %cst = arith.constant dense<0.000000e+00> : vector<16x128xf32>
    %7 = tpu.matmul %1, %6, %cst {dimension_numbers = #tpu.dot_dimension_numbers<[1], [0], [0], [1], [0, 0, 1, 1], [], []>} : vector<16x128xf32>, vector<128x128xf32>, vector<16x128xf32> -> vector<16x128xf32>
    %c0_10 = arith.constant 0 : index
    %c0_11 = arith.constant 0 : index
    %8 = vector.load %arg7[%c0_10, %c0_11] : memref<1x128xf32, #tpu.memory_space<vmem>>, vector<1x128xf32>
    %9 = vector.broadcast %8 : vector<1x128xf32> to vector<16x128xf32>
    %10 = arith.addf %7, %9 : vector<16x128xf32>
    %cst_12 = arith.constant 0.176776692 : f32
    %11 = vector.broadcast %cst_12 : f32 to vector<16x128xf32>
    %12 = arith.mulf %10, %11 : vector<16x128xf32>
    %c0_13 = arith.constant 0 : index
    %c0_14 = arith.constant 0 : index
    %13 = vector.load %arg5[%c0_13, %c0_14] : memref<128x128xf32, #tpu.memory_space<vmem>>, vector<128x128xf32>
    %cst_15 = arith.constant dense<0.000000e+00> : vector<16x128xf32>
    %14 = tpu.matmul %3, %13, %cst_15 {dimension_numbers = #tpu.dot_dimension_numbers<[1], [0], [0], [1], [0, 0, 1, 1], [], []>} : vector<16x128xf32>, vector<128x128xf32>, vector<16x128xf32> -> vector<16x128xf32>
    %c0_16 = arith.constant 0 : index
    %c0_17 = arith.constant 0 : index
    %15 = vector.load %arg8[%c0_16, %c0_17] : memref<1x128xf32, #tpu.memory_space<vmem>>, vector<1x128xf32>
    %16 = vector.broadcast %15 : vector<1x128xf32> to vector<16x128xf32>
    %17 = arith.addf %14, %16 : vector<16x128xf32>
    %c0_18 = arith.constant 0 : index
    %c0_19 = arith.constant 0 : index
    %18 = vector.load %arg6[%c0_18, %c0_19] : memref<128x128xf32, #tpu.memory_space<vmem>>, vector<128x128xf32>
    %cst_20 = arith.constant dense<0.000000e+00> : vector<16x128xf32>
    %19 = tpu.matmul %5, %18, %cst_20 {dimension_numbers = #tpu.dot_dimension_numbers<[1], [0], [0], [1], [0, 0, 1, 1], [], []>} : vector<16x128xf32>, vector<128x128xf32>, vector<16x128xf32> -> vector<16x128xf32>
    %c0_21 = arith.constant 0 : index
    %c0_22 = arith.constant 0 : index
    %20 = vector.load %arg9[%c0_21, %c0_22] : memref<1x128xf32, #tpu.memory_space<vmem>>, vector<1x128xf32>
    %21 = vector.broadcast %20 : vector<1x128xf32> to vector<16x128xf32>
    %22 = arith.addf %19, %21 : vector<16x128xf32>
    %23 = vector.extract_strided_slice %12 {offsets = [0, 0], sizes = [16, 32], strides = [1, 1]} : vector<16x128xf32> to vector<16x32xf32>
    %24 = vector.extract_strided_slice %17 {offsets = [0, 0], sizes = [16, 32], strides = [1, 1]} : vector<16x128xf32> to vector<16x32xf32>
    %cst_23 = arith.constant dense<0.000000e+00> : vector<16x16xf32>
    %25 = tpu.matmul %23, %24, %cst_23 {dimension_numbers = #tpu.dot_dimension_numbers<[1], [1], [0], [0], [0, 0, 1, 0], [], []>} : vector<16x32xf32>, vector<16x32xf32>, vector<16x16xf32> -> vector<16x16xf32>
    %26 = vector.extract_strided_slice %12 {offsets = [0, 32], sizes = [16, 32], strides = [1, 1]} : vector<16x128xf32> to vector<16x32xf32>
    %27 = vector.extract_strided_slice %17 {offsets = [0, 32], sizes = [16, 32], strides = [1, 1]} : vector<16x128xf32> to vector<16x32xf32>
    %cst_24 = arith.constant dense<0.000000e+00> : vector<16x16xf32>
    %28 = tpu.matmul %26, %27, %cst_24 {dimension_numbers = #tpu.dot_dimension_numbers<[1], [1], [0], [0], [0, 0, 1, 0], [], []>} : vector<16x32xf32>, vector<16x32xf32>, vector<16x16xf32> -> vector<16x16xf32>
    %29 = vector.extract_strided_slice %12 {offsets = [0, 64], sizes = [16, 32], strides = [1, 1]} : vector<16x128xf32> to vector<16x32xf32>
    %30 = vector.extract_strided_slice %17 {offsets = [0, 64], sizes = [16, 32], strides = [1, 1]} : vector<16x128xf32> to vector<16x32xf32>
    %cst_25 = arith.constant dense<0.000000e+00> : vector<16x16xf32>
    %31 = tpu.matmul %29, %30, %cst_25 {dimension_numbers = #tpu.dot_dimension_numbers<[1], [1], [0], [0], [0, 0, 1, 0], [], []>} : vector<16x32xf32>, vector<16x32xf32>, vector<16x16xf32> -> vector<16x16xf32>
    %32 = vector.extract_strided_slice %12 {offsets = [0, 96], sizes = [16, 32], strides = [1, 1]} : vector<16x128xf32> to vector<16x32xf32>
    %33 = vector.extract_strided_slice %17 {offsets = [0, 96], sizes = [16, 32], strides = [1, 1]} : vector<16x128xf32> to vector<16x32xf32>
    %cst_26 = arith.constant dense<0.000000e+00> : vector<16x16xf32>
    %34 = tpu.matmul %32, %33, %cst_26 {dimension_numbers = #tpu.dot_dimension_numbers<[1], [1], [0], [0], [0, 0, 1, 0], [], []>} : vector<16x32xf32>, vector<16x32xf32>, vector<16x16xf32> -> vector<16x16xf32>
    %35 = vector.shape_cast %25 : vector<16x16xf32> to vector<1x16x16xf32>
    %36 = vector.shape_cast %28 : vector<16x16xf32> to vector<1x16x16xf32>
    %37 = vector.shape_cast %31 : vector<16x16xf32> to vector<1x16x16xf32>
    %38 = vector.shape_cast %34 : vector<16x16xf32> to vector<1x16x16xf32>
    %39 = tpu.concatenate %35, %36, %37, %38 in 0 : vector<1x16x16xf32>, vector<1x16x16xf32>, vector<1x16x16xf32>, vector<1x16x16xf32> -> vector<4x16x16xf32>
    %cst_27 = arith.constant dense<0xFF800000> : vector<4x16xf32>
    %40 = vector.multi_reduction <maximumf>, %39, %cst_27 [2] : vector<4x16x16xf32> to vector<4x16xf32>
    %41 = vector.shape_cast %40 : vector<4x16xf32> to vector<4x16x1xf32>
    %42 = vector.broadcast %41 : vector<4x16x1xf32> to vector<4x16x16xf32>
    %43 = arith.subf %39, %42 : vector<4x16x16xf32>
    %44 = math.exp %43 : vector<4x16x16xf32>
    %cst_28 = arith.constant dense<0.000000e+00> : vector<4x16xf32>
    %45 = vector.multi_reduction <add>, %44, %cst_28 [2] : vector<4x16x16xf32> to vector<4x16xf32>
    %46 = vector.shape_cast %45 : vector<4x16xf32> to vector<4x16x1xf32>
    %47 = tpu.reciprocal %46 {approx = true} : vector<4x16x1xf32> -> vector<4x16x1xf32>
    %48 = vector.broadcast %47 : vector<4x16x1xf32> to vector<4x16x16xf32>
    %49 = arith.mulf %44, %48 : vector<4x16x16xf32>
    %50 = vector.extract_strided_slice %49 {offsets = [0, 0, 0], sizes = [1, 16, 16], strides = [1, 1, 1]} : vector<4x16x16xf32> to vector<1x16x16xf32>
    %51 = vector.shape_cast %50 : vector<1x16x16xf32> to vector<16x16xf32>
    %52 = vector.extract_strided_slice %22 {offsets = [0, 0], sizes = [16, 32], strides = [1, 1]} : vector<16x128xf32> to vector<16x32xf32>
    %cst_29 = arith.constant dense<0.000000e+00> : vector<16x32xf32>
    %53 = tpu.matmul %51, %52, %cst_29 {dimension_numbers = #tpu.dot_dimension_numbers<[1], [0], [0], [1], [0, 0, 1, 1], [], []>} : vector<16x16xf32>, vector<16x32xf32>, vector<16x32xf32> -> vector<16x32xf32>
    %c0_30 = arith.constant 0 : index
    %c0_31 = arith.constant 0 : index
    %c0_32 = arith.constant 0 : index
    %54 = vector.load %arg10[%c0_30, %c0_31, %c0_32] : memref<1x16x128xf32, #tpu.memory_space<vmem>>, vector<1x16x32xf32>
    %55 = vector.shape_cast %54 : vector<1x16x32xf32> to vector<16x32xf32>
    %56 = vector.shape_cast %53 : vector<16x32xf32> to vector<1x16x32xf32>
    tpu.vector_store %arg10[%c0_30, %c0_31, %c0_32], %56 {strides = array<i32>} : memref<1x16x128xf32, #tpu.memory_space<vmem>>, vector<1x16x32xf32>,
    %57 = vector.extract_strided_slice %49 {offsets = [1, 0, 0], sizes = [1, 16, 16], strides = [1, 1, 1]} : vector<4x16x16xf32> to vector<1x16x16xf32>
    %58 = vector.shape_cast %57 : vector<1x16x16xf32> to vector<16x16xf32>
    %59 = vector.extract_strided_slice %22 {offsets = [0, 32], sizes = [16, 32], strides = [1, 1]} : vector<16x128xf32> to vector<16x32xf32>
    %cst_33 = arith.constant dense<0.000000e+00> : vector<16x32xf32>
    %60 = tpu.matmul %58, %59, %cst_33 {dimension_numbers = #tpu.dot_dimension_numbers<[1], [0], [0], [1], [0, 0, 1, 1], [], []>} : vector<16x16xf32>, vector<16x32xf32>, vector<16x32xf32> -> vector<16x32xf32>
    %c0_34 = arith.constant 0 : index
    %c0_35 = arith.constant 0 : index
    %c32 = arith.constant 32 : index
    %61 = vector.load %arg10[%c0_34, %c0_35, %c32] : memref<1x16x128xf32, #tpu.memory_space<vmem>>, vector<1x16x32xf32>
    %62 = vector.shape_cast %61 : vector<1x16x32xf32> to vector<16x32xf32>
    %63 = vector.shape_cast %60 : vector<16x32xf32> to vector<1x16x32xf32>
    tpu.vector_store %arg10[%c0_34, %c0_35, %c32], %63 {strides = array<i32>} : memref<1x16x128xf32, #tpu.memory_space<vmem>>, vector<1x16x32xf32>,
    %64 = vector.extract_strided_slice %49 {offsets = [2, 0, 0], sizes = [1, 16, 16], strides = [1, 1, 1]} : vector<4x16x16xf32> to vector<1x16x16xf32>
    %65 = vector.shape_cast %64 : vector<1x16x16xf32> to vector<16x16xf32>
    %66 = vector.extract_strided_slice %22 {offsets = [0, 64], sizes = [16, 32], strides = [1, 1]} : vector<16x128xf32> to vector<16x32xf32>
    %cst_36 = arith.constant dense<0.000000e+00> : vector<16x32xf32>
    %67 = tpu.matmul %65, %66, %cst_36 {dimension_numbers = #tpu.dot_dimension_numbers<[1], [0], [0], [1], [0, 0, 1, 1], [], []>} : vector<16x16xf32>, vector<16x32xf32>, vector<16x32xf32> -> vector<16x32xf32>
    %c0_37 = arith.constant 0 : index
    %c0_38 = arith.constant 0 : index
    %c64 = arith.constant 64 : index
    %68 = vector.load %arg10[%c0_37, %c0_38, %c64] : memref<1x16x128xf32, #tpu.memory_space<vmem>>, vector<1x16x32xf32>
    %69 = vector.shape_cast %68 : vector<1x16x32xf32> to vector<16x32xf32>
    %70 = vector.shape_cast %67 : vector<16x32xf32> to vector<1x16x32xf32>
    tpu.vector_store %arg10[%c0_37, %c0_38, %c64], %70 {strides = array<i32>} : memref<1x16x128xf32, #tpu.memory_space<vmem>>, vector<1x16x32xf32>,
    %71 = vector.extract_strided_slice %49 {offsets = [3, 0, 0], sizes = [1, 16, 16], strides = [1, 1, 1]} : vector<4x16x16xf32> to vector<1x16x16xf32>
    %72 = vector.shape_cast %71 : vector<1x16x16xf32> to vector<16x16xf32>
    %73 = vector.extract_strided_slice %22 {offsets = [0, 96], sizes = [16, 32], strides = [1, 1]} : vector<16x128xf32> to vector<16x32xf32>
    %cst_39 = arith.constant dense<0.000000e+00> : vector<16x32xf32>
    %74 = tpu.matmul %72, %73, %cst_39 {dimension_numbers = #tpu.dot_dimension_numbers<[1], [0], [0], [1], [0, 0, 1, 1], [], []>} : vector<16x16xf32>, vector<16x32xf32>, vector<16x32xf32> -> vector<16x32xf32>
    %c0_40 = arith.constant 0 : index
    %c0_41 = arith.constant 0 : index
    %c96 = arith.constant 96 : index
    %75 = vector.load %arg10[%c0_40, %c0_41, %c96] : memref<1x16x128xf32, #tpu.memory_space<vmem>>, vector<1x16x32xf32>
    %76 = vector.shape_cast %75 : vector<1x16x32xf32> to vector<16x32xf32>
    %77 = vector.shape_cast %74 : vector<16x32xf32> to vector<1x16x32xf32>
    tpu.vector_store %arg10[%c0_40, %c0_41, %c96], %77 {strides = array<i32>} : memref<1x16x128xf32, #tpu.memory_space<vmem>>, vector<1x16x32xf32>,
    %78 = vector.shape_cast %49 : vector<4x16x16xf32> to vector<4x1x16x16xf32>
    %c0_42 = arith.constant 0 : index
    %c0_43 = arith.constant 0 : index
    %c0_44 = arith.constant 0 : index
    %c0_45 = arith.constant 0 : index
    %79 = vector.load %arg11[%c0_42, %c0_43, %c0_44, %c0_45] : memref<4x1x16x16xf32, #tpu.memory_space<vmem>>, vector<4x1x16x16xf32>
    tpu.vector_store %arg11[%c0_42, %c0_43, %c0_44, %c0_45], %78 {strides = array<i32>} : memref<4x1x16x16xf32, #tpu.memory_space<vmem>>, vector<4x1x16x16xf32>,
    return
  }
  func.func @transform_0(%arg0: i32) -> (i32, i32, i32) {
    %c0_i32 = arith.constant 0 : i32
    %c0_i32_0 = arith.constant 0 : i32
    %c0_i32_1 = arith.constant 0 : i32
    return %arg0, %c0_i32, %c0_i32_0 : i32, i32, i32
  }
  func.func @transform_1(%arg0: i32) -> (i32, i32, i32) {
    %c0_i32 = arith.constant 0 : i32
    %c0_i32_0 = arith.constant 0 : i32
    %c0_i32_1 = arith.constant 0 : i32
    return %arg0, %c0_i32, %c0_i32_0 : i32, i32, i32
  }
  func.func @transform_2(%arg0: i32) -> (i32, i32, i32) {
    %c0_i32 = arith.constant 0 : i32
    %c0_i32_0 = arith.constant 0 : i32
    %c0_i32_1 = arith.constant 0 : i32
    return %arg0, %c0_i32, %c0_i32_0 : i32, i32, i32
  }
  func.func @transform_3(%arg0: i32) -> (i32, i32) {
    %c0_i32 = arith.constant 0 : i32
    %c0_i32_0 = arith.constant 0 : i32
    %c0_i32_1 = arith.constant 0 : i32
    return %c0_i32, %c0_i32_0 : i32, i32
  }
  func.func @transform_4(%arg0: i32) -> (i32, i32) {
    %c0_i32 = arith.constant 0 : i32
    %c0_i32_0 = arith.constant 0 : i32
    %c0_i32_1 = arith.constant 0 : i32
    return %c0_i32, %c0_i32_0 : i32, i32
  }
  func.func @transform_5(%arg0: i32) -> (i32, i32) {
    %c0_i32 = arith.constant 0 : i32
    %c0_i32_0 = arith.constant 0 : i32
    %c0_i32_1 = arith.constant 0 : i32
    return %c0_i32, %c0_i32_0 : i32, i32
  }
  func.func @transform_6(%arg0: i32) -> (i32, i32) {
    %c0_i32 = arith.constant 0 : i32
    %c0_i32_0 = arith.constant 0 : i32
    %c0_i32_1 = arith.constant 0 : i32
    return %c0_i32, %c0_i32_0 : i32, i32
  }
  func.func @transform_7(%arg0: i32) -> (i32, i32) {
    %c0_i32 = arith.constant 0 : i32
    %c0_i32_0 = arith.constant 0 : i32
    %c0_i32_1 = arith.constant 0 : i32
    return %c0_i32, %c0_i32_0 : i32, i32
  }
  func.func @transform_8(%arg0: i32) -> (i32, i32) {
    %c0_i32 = arith.constant 0 : i32
    %c0_i32_0 = arith.constant 0 : i32
    %c0_i32_1 = arith.constant 0 : i32
    return %c0_i32, %c0_i32_0 : i32, i32
  }
  func.func @transform_9(%arg0: i32) -> (i32, i32, i32) {
    %c0_i32 = arith.constant 0 : i32
    %c0_i32_0 = arith.constant 0 : i32
    %c0_i32_1 = arith.constant 0 : i32
    return %arg0, %c0_i32, %c0_i32_0 : i32, i32, i32
  }
  func.func @transform_10(%arg0: i32) -> (i32, i32, i32, i32) {
    %c0_i32 = arith.constant 0 : i32
    %c0_i32_0 = arith.constant 0 : i32
    %c0_i32_1 = arith.constant 0 : i32
    %c0_i32_2 = arith.constant 0 : i32
    return %c0_i32, %arg0, %c0_i32_0, %c0_i32_1 : i32, i32, i32, i32
  }
}

</mosaic_0001>

<bundles_post_ra>
// kernel: tpu_custom_call.1
= control target key start
LH: loop header
LB: loop body
LE: loop exit
PB: predicated region body
PF: predicated region fallthrough
CT: control target
= control target key end

     0   :  { %s3363_s0 = inlined_call_operand.hbm [shape: f32[2,16,128], index: 0, kind: input, shape index: {}]   ;;  %s3364_s1 = inlined_call_operand.hbm [shape: f32[2,16,128], index: 1, kind: input, shape index: {}]   ;;  %s3365_s2 = inlined_call_operand.hbm [shape: f32[2,16,128], index: 2, kind: input, shape index: {}]   ;;  %s3366_s3 = inlined_call_operand.hbm [shape: f32[128,128], index: 3, kind: input, shape index: {}]   ;;  %s3367_s4 = inlined_call_operand.hbm [shape: f32[128,128], index: 4, kind: input, shape index: {}]   ;;  %s3368_s5 = inlined_call_operand.hbm [shape: f32[128,128], index: 5, kind: input, shape index: {}]   ;;  %s3369_s6 = inlined_call_operand.vmem [shape: f32[1,128], index: 6, kind: input, shape index: {}]   ;;  %s3370_s7 = inlined_call_operand.vmem [shape: f32[1,128], index: 7, kind: input, shape index: {}]   ;;  %s3371_s8 = inlined_call_operand.vmem [shape: f32[1,128], index: 8, kind: input, shape index: {}]   ;;  %s3372_s9 = inlined_call_operand.hbm [shape: f32[2,16,128], index: 9, kind: output, shape index: {0}]   ;;  %s3373_s10 = inlined_call_operand.hbm [shape: f32[4,2,16,16], index: 10, kind: output, shape index: {1}]  }
   0x1   :  { %3399 = sst [smem:[#allocation30_spill]] %s3364_s1 }
   0x2   :  { %3400 = sst [smem:[#allocation31_spill]] %s3366_s3 }
   0x3   :  { %3401 = sst [smem:[#allocation32_spill]] %s3369_s6 }
   0x4   :  { %3402 = sst [smem:[#allocation33_spill]] %s3370_s7 }
   0x5   :  { %3403 = sst [smem:[#allocation34_spill]] %s3371_s8 }
   0x6   :  { %3404 = sst [smem:[#allocation35_spill]] %s3372_s9 }
   0x7   :  { %3405 = sst [smem:[#allocation36_spill]] %s3373_s10 }
   0x8   :  { %16 = vsyncpa [#allocation3], 0 }
   0x9   :  { %18 = vsyncpa [#allocation3 + $0x1], 0 }
   0xa   :  { %19 = vsyncpa [#allocation6], 0 }
   0xb   :  { %21 = vsyncpa [#allocation6 + $0x1], 0 }
   0xc   :  { %22 = vsyncpa [#allocation9], 0 }
   0xd   :  { %23 = vsyncpa [#allocation12], 0 }
   0xe   :  { %24 = vsyncpa [#allocation4], 0 }
   0xf   :  { %26 = vsyncpa [#allocation4 + $0x1], 0 }
  0x10   :  { %27 = vsyncpa [#allocation15], 0 }
  0x11   :  { %29 = vsyncpa [#allocation15 + $0x1], 0  ;;  %s2845_s13 = smov 0   ;;  %s2847_s14 = smov 0  }
  0x12   :  { %s2849_s15 = smov 0   ;;  %s2851_s16 = smov 0  }
  0x13 LB: > { %3406 = sst [smem:[#allocation24_spill]] %s2755_s13  ;;  %s2866_s17 = sadd.s32 4294967295, %s2767_s16   ;;  %s2767_s16 = sphi %s2851_s16, %s3452_s16   ;;  %s2763_s15 = sphi %s2849_s15, %s3456_s15   ;;  %s2759_s14 = sphi %s2847_s14, %s3455_s14   ;;  %s2755_s13 = sphi %s2845_s13, %s3454_s13  }
  0x14   : > { %3407 = sst [smem:[#allocation25_spill]] %s2767_s16  ;;  %s1890_s18 = sadd.s32 4294967294, %s2767_s16  }
  0x15   : > { %s2870_s19 = sadd.s32 1, %s2767_s16   ;;  %s42_s20 = sadd.s32 1, %s2763_s15 }
  0x16   : > { %3408 = sst [smem:[#allocation26_spill]] %s2870_s19  ;;  %s39_s21 = ssub.s32 %s2767_s16, %s2870_s19 }
  0x17   : > { %p49_p0 = scmp.ne.s32.totalorder %s2763_s15, %s2759_s14  ;;  %p40_p1 = scmp.eq.s32.totalorder %s39_s21, 0 }
  0x18   : > { %p50_p2 = scmp.eq.s32.totalorder %s2767_s16, 0  ;;  %p55_p3 = scmp.ne.s32.totalorder %s2759_s14, %s2755_s13 }
  0x19   : > { %p3378_p4 = scmp.eq.s32.totalorder %s2866_s17, 0  ;;  %p257_p7 = scmp.eq.s32.totalorder %s2866_s17, 1 }
  0x1a   : > { %s2882_s22 = scalar_select %p40_p1, %s2763_s15, %s42_s20  }
  0x1b   : > { %p2884_p5 = por %p50_p2, %p49_p0  ;;  %p2890_p6 = por %p3378_p4, %p55_p3 }
  0x1c   : > { %3409 = sst [smem:[#allocation27_spill]] %s2882_s22  ;;  %p263_p8 = scmp.eq.s32.totalorder %s1890_s18, 1 }
  0x1d   : > { %s3410_s23 = scalar_select %p2884_p5, 1, 0 }
  0x1e   : > { %s3411_s24 = scalar_select %p2890_p6, 1, 0 }
  0x1f   : > { %p1891_p9 = scmp.ge.s32.totalorder %s2767_s16, 1  ;;  %p296_p10 = scmp.lt.s32.totalorder %s2767_s16, 3 }
  0x20   : > { %p2897_p11 = por %p257_p7, %p49_p0  ;;  %p2901_p12 = por %p263_p8, %p55_p3 }
  0x21   : > { %p2905_p13 = pnand %p1891_p9, %p296_p10  ;;  %s2769_s28 = smov [#allocation8]  }
  0x22   : > { %s3412_s25 = scalar_select %p2897_p11, 1, 0 }
  0x23   : > { %s3414_s26 = scalar_select %p2901_p12, 1, 0 }
  0x24   : > { %3413 = sst [smem:[#allocation28_spill]] %s3412_s25  ;;  %p2365_p1 = pneg %p2905_p13 }
  0x25   : > { %3415 = sst [smem:[#allocation29_spill]] %s3414_s26  ;;  %s308_s29 = sshll.u32 %s2769_s28, 4  ;;  %s309_s29 = int_to_ptr.vmem [resolvable:$true] %s308_s29 }
  0x26   : > { %s3416_s27 = scalar_select %p2905_p13, 1, 0 }
  0x27   : > { %p2913_p2 = pnand %p2365_p1, %p3378_p4  ;;  %s3377_s11 = sand.u32 1, %s2763_s15  }
  0x28   : > { %s2922_s12 = sshll.u32 %s3377_s11, 4  ;;  %s3418_s3 = sld [smem:[#allocation31_spill]] }
  0x29   : > { %s3417_s30 = scalar_select %p2913_p2, 1, 0 }
  0x2a   : > { %p2932_p8 = pneg %p2913_p2 }
  0x2c   : > { %s3419_s28 = scalar_select %p2932_p8, 1, 0 }
  0x2e   : > { %s2511_s21 = scalar_lea.hbm %s3418_s3, 2048 }
  0x2f   : > { %p2512_p7 = scmp.ne.s32.totalorder %s3418_s3, %s2511_s21  ;;  %p2518_p1 = scmp.lt.u32.totalorder %s2511_s21, %s3418_s3 }
  0x31   : > { %p2514_p9 = pnand %p2932_p8, %p2512_p7 }
  0x33   : > { %p2515_p10 = pneg %p2514_p9 }
  0x35   : > { %p2520_p0 = pnand %p2518_p1, %p2515_p10 }
  0x37   : > { %2523 = shalt.err (!%p2520_p0)
}
  0x38   : > { %s2524_s18 = scalar_lea.vmem %s309_s29, 2048  ;;  %p2532_p11 = scmp.lt.s32.totalorder %s309_s29, %s309_s29 }
  0x39   : > { %p2525_p4 = scmp.ne.s32.totalorder %s309_s29, %s2524_s18  ;;  %p2533_p6 = scmp.lt.s32.totalorder %s2524_s18, %s2524_s18 }
  0x3b   : > { %p2527_p3 = pnand %p2525_p4, %p2932_p8  ;;  %p2534_p13 = por %p2533_p6, %p2532_p11 }
  0x3d   : > { %p2528_p12 = pneg %p2527_p3 }
  0x3f   : > { %p2535_p5 = pnand %p2534_p13, %p2528_p12 }
  0x41   : > { %2538 = shalt.err (!%p2535_p5)
}
  0x42   : > { %s3384_s19 = smov 128   ;;  %s3386_s22 = smov 8  }
  0x43   : > { %2368 = dma.hbm_to_vmem [thread:$0]  (!%p2913_p2), %s3418_s3, 2048, %s309_s29, [#allocation9], %s3384_s19, %s3384_s19, %s3386_s22  }
  0x44   : > { %s2952_s20 = sshll.u32 %s2767_s16, 8  ;;  %p3420_p4 = scmp.ne.s32.totalorder %s3410_s23, 0 }
  0x45   : > { %p3421_p5 = scmp.lt.s32.totalorder %s2767_s16, 2  ;;  %s378_s18 = sand.u32 1, %s2767_s16  }
  0x46   : > { %s3423_s1 = sld [smem:[#allocation30_spill]]  ;;  %s382_s29 = scalar_lea.vmem [#allocation5], %s2922_s12 }
  0x47   : > { %p2958_p6 = pnand %p3421_p5, %p3420_p4  ;;  %s389_s26 = sshll.u32 %s382_s29, 4  ;;  %s2970_s26 = int_to_ptr.vmem [resolvable:$true] %s389_s26 }
  0x48   : > { %s2972_s23 = scalar_lea.sflag [#allocation6], %s378_s18 }
  0x49   : > { %s3422_s21 = scalar_select %p2958_p6, 1, 0 }
  0x4a   : > { %p2978_p12 = pneg %p2958_p6 }
  0x4c   : > { %s2967_s9 = scalar_lea.hbm %s3423_s1, %s2952_s20  ;;  %s2544_s22 = scalar_lea.hbm %s3423_s1, 512 }
  0x4d   : > { %s2539_s11 = scalar_lea.hbm %s2967_s9, 256  ;;  %p2545_p3 = scmp.lt.u32.totalorder %s2967_s9, %s3423_s1 }
  0x4e   : > { %p2540_p11 = scmp.ne.s32.totalorder %s2967_s9, %s2539_s11  ;;  %p2546_p7 = scmp.lt.u32.totalorder %s2544_s22, %s2539_s11 }
  0x4f   : > { %s3424_s19 = scalar_select %p2978_p12, 1, 0 }
  0x50   : > { %p2542_p13 = pnand %p2978_p12, %p2540_p11  ;;  %p2547_p9 = por %p2546_p7, %p2545_p3 }
  0x51   : > { %p2548_p10 = scmp.lt.u32.totalorder %s2539_s11, %s2967_s9 }
  0x52   : > { %p2543_p0 = pneg %p2542_p13 }
  0x53   : > { %p2549_p1 = por %p2548_p10, %p2547_p9 }
  0x55   : > { %p2550_p4 = pnand %p2549_p1, %p2543_p0 }
  0x57   : > { %2553 = shalt.err (!%p2550_p4)
}
  0x58   : > { %s2554_s18 = scalar_lea.vmem %s2970_s26, 256  ;;  %s2772_s10 = smov [#allocation5]  }
  0x59   : > { %p2555_p5 = scmp.ne.s32.totalorder %s2970_s26, %s2554_s18  ;;  %s2559_s13 = sshll.u32 %s2772_s10, 4  ;;  %s2560_s13 = int_to_ptr.vmem [resolvable:$false] %s2559_s13 }
  0x5a   : > { %s2561_s3 = scalar_lea.vmem %s2560_s13, 512  ;;  %p2562_p2 = scmp.lt.s32.totalorder %s2970_s26, %s2560_s13 }
  0x5b   : > { %p2557_p11 = pnand %p2555_p5, %p2978_p12  ;;  %p2563_p8 = scmp.lt.s32.totalorder %s2561_s3, %s2554_s18 }
  0x5d   : > { %p2558_p13 = pneg %p2557_p11  ;;  %p2564_p3 = por %p2563_p8, %p2562_p2 }
  0x5f   : > { %p2565_p7 = pnand %p2564_p3, %p2558_p13 }
  0x61   : > { %2568 = shalt.err (!%p2565_p7)
}
  0x62   : > { %s3425_s22 = smov 8   ;;  %s3426_s11 = smov 128  }
  0x63   : > { %2381 = dma.hbm_to_vmem [thread:$0]  (!%p2958_p6), %s2967_s9, 256, %s2970_s26, %s2972_s23, %s3426_s11, %s3426_s11, %s3425_s22  }
  0x64   : > { %s2773_s29 = smov [#allocation10]   ;;  %s2774_s10 = smov [#allocation11]  }
  0x65   : > { %s321_s1 = sshll.u32 %s2773_s29, 4  ;;  %s334_s16 = sshll.u32 %s2774_s10, 4  ;;  %s322_s1 = int_to_ptr.vmem [resolvable:$true] %s321_s1  ;;  %s335_s16 = int_to_ptr.vmem [resolvable:$true] %s334_s16 }
  0x66   : > { %s2569_s3 = scalar_lea.hbm %s3367_s4, 2048  ;;  %p3427_p8 = scmp.ne.s32.totalorder %s3419_s28, 0 }
  0x67   : > { %p2570_p2 = scmp.ne.s32.totalorder %s3367_s4, %s2569_s3  ;;  %p2576_p10 = scmp.lt.u32.totalorder %s2569_s3, %s3367_s4 }
  0x69   : > { %p2572_p0 = pnand %p2570_p2, %p3427_p8 }
  0x6b   : > { %p2573_p9 = pneg %p2572_p0 }
  0x6d   : > { %p2578_p1 = pnand %p2576_p10, %p2573_p9 }
  0x6f   : > { %2581 = shalt.err (!%p2578_p1)
}
  0x70   : > { %s2582_s9 = scalar_lea.vmem %s322_s1, 2048  ;;  %p2590_p13 = scmp.lt.s32.totalorder %s322_s1, %s322_s1 }
  0x71   : > { %p2583_p4 = scmp.ne.s32.totalorder %s322_s1, %s2582_s9  ;;  %p2591_p3 = scmp.lt.s32.totalorder %s2582_s9, %s2582_s9 }
  0x73   : > { %p2585_p5 = pnand %p2583_p4, %p3427_p8  ;;  %p2592_p7 = por %p2591_p3, %p2590_p13 }
  0x75   : > { %p2586_p11 = pneg %p2585_p5 }
  0x77   : > { %p2593_p6 = pnand %p2592_p7, %p2586_p11 }
  0x79   : > { %2596 = shalt.err (!%p2593_p6)
}
  0x7a   : > { %p3428_p2 = scmp.ne.s32.totalorder %s3417_s30, 0  ;;  %s2597_s26 = scalar_lea.hbm %s3368_s5, 2048 }
  0x7b   : > { %p2598_p0 = scmp.ne.s32.totalorder %s3368_s5, %s2597_s26  ;;  %p2604_p10 = scmp.lt.u32.totalorder %s2597_s26, %s3368_s5 }
  0x7c   : > { %2371 = dma.hbm_to_vmem [thread:$0]  (!%p3428_p2), %s3367_s4, 2048, %s322_s1, [#allocation9], %s3426_s11, %s3426_s11, %s3425_s22  }
  0x7d   : > { %p2600_p6 = pnand %p2598_p0, %p3427_p8 }
  0x7f   : > { %p2601_p9 = pneg %p2600_p6 }
  0x81   : > { %p2606_p1 = pnand %p2604_p10, %p2601_p9 }
  0x83   : > { %2609 = shalt.err (!%p2606_p1)
}
  0x84   : > { %s2610_s3 = scalar_lea.vmem %s335_s16, 2048  ;;  %p2618_p13 = scmp.lt.s32.totalorder %s335_s16, %s335_s16 }
  0x85   : > { %p2611_p4 = scmp.ne.s32.totalorder %s335_s16, %s2610_s3  ;;  %p2619_p3 = scmp.lt.s32.totalorder %s2610_s3, %s2610_s3 }
  0x87   : > { %p2613_p5 = pnand %p2611_p4, %p3427_p8  ;;  %p2620_p7 = por %p2619_p3, %p2618_p13 }
  0x89   : > { %p2614_p11 = pneg %p2613_p5 }
  0x8b   : > { %p2621_p12 = pnand %p2620_p7, %p2614_p11 }
  0x8d   : > { %2624 = shalt.err (!%p2621_p12)
}
  0x8e   : > { %2374 = dma.hbm_to_vmem [thread:$0]  (!%p3428_p2), %s3368_s5, 2048, %s335_s16, [#allocation12], %s3426_s11, %s3426_s11, %s3425_s22  }
  0x8f   : > { %s3051_s7 = scalar_lea.hbm %s3363_s0, %s2952_s20  ;;  %s361_s30 = scalar_lea.vmem [#allocation2], %s2922_s12 }
  0x90   : > { %s368_s8 = sshll.u32 %s361_s30, 4  ;;  %s3060_s29 = scalar_lea.hbm %s3365_s2, %s2952_s20  ;;  %s3054_s8 = int_to_ptr.vmem [resolvable:$true] %s368_s8 }
  0x91   : > { %s3429_s10 = sand.u32 1, %s2763_s15   ;;  %s2625_s13 = scalar_lea.hbm %s3051_s7, 256 }
  0x92   : > { %s3064_s16 = scalar_lea.sflag [#allocation3], %s3429_s10  ;;  %p2626_p12 = scmp.ne.s32.totalorder %s3051_s7, %s2625_s13 }
  0x93   : > { %p3430_p8 = scmp.ne.s32.totalorder %s3424_s19, 0  ;;  %s2630_s1 = scalar_lea.hbm %s3363_s0, 512 }
  0x94   : > { %p2631_p6 = scmp.lt.u32.totalorder %s3051_s7, %s3363_s0  ;;  %p2632_p9 = scmp.lt.u32.totalorder %s2630_s1, %s2625_s13 }
  0x95   : > { %p2628_p2 = pnand %p2626_p12, %p3430_p8  ;;  %p2634_p1 = scmp.lt.u32.totalorder %s2625_s13, %s3051_s7 }
  0x96   : > { %p2633_p10 = por %p2632_p9, %p2631_p6 }
  0x97   : > { %p2629_p0 = pneg %p2628_p2 }
  0x98   : > { %p2635_p4 = por %p2634_p1, %p2633_p10 }
  0x9a   : > { %p2636_p5 = pnand %p2635_p4, %p2629_p0 }
  0x9c   : > { %2639 = shalt.err (!%p2636_p5)
}
  0x9d   : > { %s2640_s20 = scalar_lea.vmem %s3054_s8, 256  ;;  %s2775_s6 = smov [#allocation2]  }
  0x9e   : > { %p2641_p11 = scmp.ne.s32.totalorder %s3054_s8, %s2640_s20  ;;  %s2645_s30 = sshll.u32 %s2775_s6, 4  ;;  %s2646_s30 = int_to_ptr.vmem [resolvable:$false] %s2645_s30 }
  0x9f   : > { %s2647_s25 = scalar_lea.vmem %s2646_s30, 512  ;;  %p2648_p7 = scmp.lt.s32.totalorder %s3054_s8, %s2646_s30 }
  0xa0   : > { %p2643_p13 = pnand %p2641_p11, %p3430_p8  ;;  %p2649_p12 = scmp.lt.s32.totalorder %s2647_s25, %s2640_s20 }
  0xa2   : > { %p2644_p3 = pneg %p2643_p13  ;;  %p2650_p2 = por %p2649_p12, %p2648_p7 }
  0xa4   : > { %p2651_p6 = pnand %p2650_p2, %p2644_p3 }
  0xa6   : > { %2654 = shalt.err (!%p2651_p6)
}
  0xa7   : > { %p3431_p0 = scmp.ne.s32.totalorder %s3422_s21, 0  ;;  %s403_s26 = scalar_lea.vmem [#allocation7], %s2922_s12 }
  0xa8   : > { %s410_s10 = sshll.u32 %s403_s26, 4  ;;  %s2655_s13 = scalar_lea.hbm %s3060_s29, 256  ;;  %s3092_s10 = int_to_ptr.vmem [resolvable:$true] %s410_s10 }
  0xa9   : > { %2378 = dma.hbm_to_vmem [thread:$0]  (!%p3431_p0), %s3051_s7, 256, %s3054_s8, %s3064_s16, %s3426_s11, %s3426_s11, %s3425_s22  }
  0xaa   : > { %p2656_p9 = scmp.ne.s32.totalorder %s3060_s29, %s2655_s13  ;;  %s2660_s1 = scalar_lea.hbm %s3365_s2, 512 }
  0xab   : > { %p2661_p4 = scmp.lt.u32.totalorder %s3060_s29, %s3365_s2  ;;  %p2662_p5 = scmp.lt.u32.totalorder %s2660_s1, %s2655_s13 }
  0xac   : > { %p2658_p10 = pnand %p2656_p9, %p3430_p8  ;;  %p2664_p13 = scmp.lt.u32.totalorder %s2655_s13, %s3060_s29 }
  0xad   : > { %p2663_p11 = por %p2662_p5, %p2661_p4 }
  0xae   : > { %p2659_p1 = pneg %p2658_p10 }
  0xaf   : > { %p2665_p3 = por %p2664_p13, %p2663_p11 }
  0xb1   : > { %p2666_p7 = pnand %p2665_p3, %p2659_p1 }
  0xb3   : > { %2669 = shalt.err (!%p2666_p7)
}
  0xb4   : > { %s2670_s12 = scalar_lea.vmem %s3092_s10, 256  ;;  %s2776_s7 = smov [#allocation7]  }
  0xb5   : > { %p2671_p12 = scmp.ne.s32.totalorder %s3092_s10, %s2670_s12  ;;  %s2675_s8 = sshll.u32 %s2776_s7, 4  ;;  %s2676_s8 = int_to_ptr.vmem [resolvable:$false] %s2675_s8 }
  0xb6   : > { %s2677_s16 = scalar_lea.vmem %s2676_s8, 512  ;;  %p2678_p9 = scmp.lt.s32.totalorder %s3092_s10, %s2676_s8 }
  0xb7   : > { %p2673_p2 = pnand %p2671_p12, %p3430_p8  ;;  %p2679_p10 = scmp.lt.s32.totalorder %s2677_s16, %s2670_s12 }
  0xb9   : > { %p2674_p6 = pneg %p2673_p2  ;;  %p2680_p4 = por %p2679_p10, %p2678_p9 }
  0xbb   : > { %p2681_p5 = pnand %p2680_p4, %p2674_p6 }
  0xbd   : > { %2684 = shalt.err (!%p2681_p5)
}
  0xbe   : > { %2384 = dma.hbm_to_vmem [thread:$0]  (!%p3431_p0), %s3060_s29, 256, %s3092_s10, %s2972_s23, %s3426_s11, %s3426_s11, %s3425_s22  }
  0xbf   : > { %p3432_p8 = scmp.ne.s32.totalorder %s3416_s27, 0 }
  0xc0   : > { %s3122_s19 = sand.u32 (!%p3432_p8), 1, %s2759_s14   ;;  %p3433_p1 = scmp.ne.s32.totalorder (!%p3432_p8), %s3411_s24, 0 }
  0xc1   : > { %422 = sbr.rel (%p3432_p8) target bundleno = 1493 (0x5d5), region = 56  ;;  %s3125_s20 = sshll.u32 (!%p3432_p8), %s3122_s19, 4 }
  0xc2   : > { %s425_s21 = scalar_lea.sflag (!%p3432_p8), [#allocation3], %s3122_s19  ;;  %s428_s6 = scalar_lea.vmem (!%p3432_p8), [#allocation2], %s3125_s20 }
  0xc8   : > { %2730 = dma.done.wait (%p3433_p1), %s425_s21, 256  }
  0xc9   : > { %2732 = vsyncadd (%p3433_p1), %s425_s21, 4294967040  ;;  %s433_s27 = sand.u32 1, %s2866_s17   ;;  %s437_s22 = scalar_lea.vmem [#allocation5], %s3125_s20 }
  0xca   : > { %s434_s23 = scalar_lea.sflag [#allocation6], %s433_s27 }
  0xcb   : > { %2734 = dma.done.wait (%p3433_p1), %s434_s23, 512  }
  0xcc   : > { %2736 = vsyncadd (%p3433_p1), %s434_s23, 4294966784  ;;  %s446_s11 = scalar_lea.vmem [#allocation7], %s3125_s20  ;;  %p3434_p0 = scmp.eq.s32.totalorder %s2866_s17, 0 }
  0xce   : > { %2738 = dma.done.wait (%p3434_p0), [#allocation9], 4096   ;;  %p3435_p11 = pmov %p3434_p0 }
  0xcf   : > { %p3436_p13 = pmov %p3434_p0 }
  0xd0   : > { %2740 = vsyncadd (%p3435_p11), [#allocation9], 4294963200 }
  0xd1   : > { %2742 = dma.done.wait (%p3436_p13), [#allocation12], 2048   ;;  %p3437_p3 = pmov %p3434_p0 }
  0xd2   : > { %v516_v0 = vld [vmem:[#allocation8] sm:$0xff]  ;;  %v517_v1 = vld [vmem:[#allocation8 + $0x8] sm:$0xff]  ;;  %v518_v5 = vld [vmem:[#allocation8 + $0x10] sm:$0xff]  ;;  %s3438_s30 = sld [smem:[#allocation32_spill]]  ;;  %s3439_s10 = sld [smem:[#allocation33_spill]]  ;;  %vm812_vm0 = vcmask 261120  }
  0xd3   : > { %2744 = vsyncadd (%p3437_p3), [#allocation12], 4294965248  ;;  %v616_v2 = vld [vmem:[#allocation10] sm:$0xff]  ;;  %v2201_v3 = vpack.c.bf16 %v517_v1, %v516_v0  ;;  %v617_v4 = vld [vmem:[#allocation10 + $0x8] sm:$0xff]  ;;  %s2777_s13 = smov 96   ;;  %s2778_s18 = smov 64  }
  0xd4   : > { %v519_v6 = vld [vmem:[#allocation8 + $0x18] sm:$0xff]  ;;  %v2233_v7 = vpack.c.bf16 %v617_v4, %v616_v2  ;;  %v618_v9 = vld [vmem:[#allocation10 + $0x10] sm:$0xff]  ;;  %v520_v11 = vld [vmem:[#allocation8 + $0x20] sm:$0xff]  ;;  %s2779_s3 = smov 32   ;;  %vm1173_vm2 = vcmask 130048   ;;  %s3442_s28 = sld [smem:[#allocation34_spill]] }
  0xd5   : > { %v2205_v8 = vpack.c.bf16 %v519_v6, %v518_v5  ;;  %v619_v10 = vld [vmem:[#allocation10 + $0x18] sm:$0xff]  ;;  %2202 = vmatprep.subr.bf16.mxu0 %v2201_v3  ;;  %v521_v13 = vld [vmem:[#allocation8 + $0x28] sm:$0xff]  ;;  %v620_v14 = vld [vmem:[#allocation10 + $0x20] sm:$0xff]  ;;  %s1913_s12 = sshll.u32 %s3122_s19, 6  ;;  %s3271_s8 = scalar_lea.vmem [#allocation13], %s3125_s20  ;;  %vm1442_vm3 = vcmask 523520  }
  0xd6   : > { %v2237_v12 = vpack.c.bf16 %v619_v10, %v618_v9  ;;  %v621_v15 = vld [vmem:[#allocation10 + $0x28] sm:$0xff]  ;;  %2234 = vmatprep.subr.bf16.mxu1 %v2233_v7  ;;  %2204 = vmatpush3.bf16.msra.mxu0 %v2201_v3  ;;  %v2209_v16 = vpack.c.bf16 %v521_v13, %v520_v11  ;;  %v522_v18 = vld [vmem:[#allocation8 + $0x30] sm:$0xff]  ;;  %v523_v19 = vld [vmem:[#allocation8 + $0x38] sm:$0xff]  ;;  %s3240_s7 = scalar_lea.vmem [#allocation14], %s1913_s12  ;;  %vm1540_vm4 = vcmask 785920   ;;  %s3443_s16 = sld [smem:[#allocation28_spill]] }
  0xd7   : > { %2236 = vmatpush3.bf16.msra.mxu1 %v2233_v7  ;;  %2206 = vmatprep.subr.bf16.mxu0 %v2205_v8  ;;  %v2241_v17 = vpack.c.bf16 %v621_v15, %v620_v14  ;;  %v622_v20 = vld [vmem:[#allocation10 + $0x30] sm:$0xff]  ;;  %v623_v21 = vld [vmem:[#allocation10 + $0x38] sm:$0xff]  ;;  %v2213_v22 = vpack.c.bf16 %v523_v19, %v522_v18  ;;  %v524_v24 = vld [vmem:[#allocation8 + $0x40] sm:$0xff]  ;;  %s1952_s20 = sshll.u32 %s2866_s17, 8  ;;  %s1668_s21 = sshll.u32 %s3271_s8, 4  ;;  %vm1638_vm5 = vcmask 1048320   ;;  %s3296_s21 = int_to_ptr.vmem [resolvable:$true] %s1668_s21 }
  0xd8   : > { %2238 = vmatprep.subr.bf16.mxu1 %v2237_v12  ;;  %v2245_v23 = vpack.c.bf16 %v623_v21, %v622_v20  ;;  %v525_v25 = vld [vmem:[#allocation8 + $0x48] sm:$0xff]  ;;  %v510_v26 = vld [vmem:[%s428_s6] sm:$0xff]  ;;  %v527_v33 = vld [vmem:[#allocation8 + $0x58] sm:$0xff]  ;;  %s3444_s23 = sld [smem:[#allocation35_spill]]  ;;  %s2685_s24 = scalar_lea.vmem %s3296_s21, 256 }
  0xd9   : > { %v624_v27 = vld [vmem:[#allocation10 + $0x40] sm:$0xff]  ;;  %v625_v28 = vld [vmem:[#allocation10 + $0x48] sm:$0xff]  ;;  %2072 = vmatprep.mubr.f32.mxu0 %v510_v26  ;;  %v2217_v30 = vpack.c.bf16 %v525_v25, %v524_v24  ;;  %v526_v32 = vld [vmem:[#allocation8 + $0x50] sm:$0xff]  ;;  %p2686_p7 = scmp.ne.s32.totalorder %s3296_s21, %s2685_s24  ;;  %s2780_s29 = smov [#allocation13]  }
  0xda   : > { %2208 = vmatpush3.bf16.msra.mxu0 %v2205_v8  ;;  %v512_v29 = vld [vmem:[%s437_s22] sm:$0xff]  ;;  %v2249_v31 = vpack.c.bf16 %v625_v28, %v624_v27  ;;  %v627_v35 = vld [vmem:[#allocation10 + $0x58] sm:$0xff]  ;;  %v2221_v36 = vpack.c.bf16 %v527_v33, %v526_v32  ;;  %v529_v39 = vld [vmem:[#allocation8 + $0x68] sm:$0xff] }
  0xdb   : > { %2240 = vmatpush3.bf16.msra.mxu1 %v2237_v12  ;;  %2210 = vmatprep.subr.bf16.mxu0 %v2209_v16  ;;  %v626_v34 = vld [vmem:[#allocation10 + $0x50] sm:$0xff]  ;;  %v528_v38 = vld [vmem:[#allocation8 + $0x60] sm:$0xff]  ;;  %v629_v41 = vld [vmem:[#allocation10 + $0x68] sm:$0xff] }
  0xdc   : > { %2242 = vmatprep.subr.bf16.mxu1 %v2241_v17  ;;  %2107 = vmatprep.mubr.f32.mxu1 %v512_v29  ;;  %v2253_v37 = vpack.c.bf16 %v627_v35, %v626_v34  ;;  %v628_v40 = vld [vmem:[#allocation10 + $0x60] sm:$0xff]  ;;  %v2225_v42 = vpack.c.bf16 %v529_v39, %v528_v38  ;;  %v530_v44 = vld [vmem:[#allocation8 + $0x70] sm:$0xff]  ;;  %v531_v45 = vld [vmem:[#allocation8 + $0x78] sm:$0xff]  ;;  %p3445_p12 = scmp.ne.s32.totalorder %s3443_s16, 0 }
  0xdd   : > { %v2257_v43 = vpack.c.bf16 %v629_v41, %v628_v40  ;;  %v630_v46 = vld [vmem:[#allocation10 + $0x70] sm:$0xff]  ;;  %v631_v47 = vld [vmem:[#allocation10 + $0x78] sm:$0xff]  ;;  %v2229_v48 = vpack.c.bf16 %v531_v45, %v530_v44  ;;  %v1914_v52 = vld [vmem:[%s3438_s30] ss:$0 sm:$0xff]  ;;  %s2689_s30 = sshll.u32 %s2780_s29, 4  ;;  %s2690_s30 = int_to_ptr.vmem [resolvable:$false] %s2689_s30 }
  0xde   : > { %2212 = vmatpush3.bf16.msra.mxu0 %v2209_v16  ;;  %v2261_v49 = vpack.c.bf16 %v631_v47, %v630_v46  ;;  %v511_v50 = vld [vmem:[%s428_s6 + $0x8] sm:$0xff]  ;;  %v1915_v53 = vld [vmem:[%s3439_s10] ss:$0 sm:$0xff]  ;;  %vm3164_vm1 = vmpackc.low %vm812_vm0, %vm812_vm0  ;;  %p2687_p2 = pnand %p2686_p7, %p3445_p12  ;;  %s2691_s25 = scalar_lea.vmem %s2690_s30, 512 }
  0xdf   : > { %2244 = vmatpush3.bf16.msra.mxu1 %v2241_v17  ;;  %2214 = vmatprep.subr.bf16.mxu0 %v2213_v22  ;;  %v513_v51 = vld [vmem:[%s437_s22 + $0x8] sm:$0xff]  ;;  %v714_v3 = vld [vmem:[#allocation11] sm:$0xff]  ;;  %v716_v5 = vld [vmem:[#allocation11 + $0x10] sm:$0xff]  ;;  %s3294_s22 = scalar_lea.hbm %s3444_s23, %s1952_s20  ;;  %p2692_p9 = scmp.lt.s32.totalorder %s3296_s21, %s2690_s30 }
  0xe0   : > { %2246 = vmatprep.subr.bf16.mxu1 %v2245_v23  ;;  %v715_v4 = vld [vmem:[#allocation11 + $0x8] sm:$0xff]  ;;  %v717_v7 = vld [vmem:[#allocation11 + $0x18] sm:$0xff]  ;;  %v718_v9 = vld [vmem:[#allocation11 + $0x20] sm:$0xff]  ;;  %p2688_p6 = pneg %p2687_p2  ;;  %p2693_p10 = scmp.lt.s32.totalorder %s2691_s25, %s2685_s24 }
  0xe1   : > { %v2265_v6 = vpack.c.bf16 %v715_v4, %v714_v3  ;;  %v2269_v8 = vpack.c.bf16 %v717_v7, %v716_v5  ;;  %v719_v10 = vld [vmem:[#allocation11 + $0x28] sm:$0xff]  ;;  %v514_v12 = vld [vmem:[%s446_s11] sm:$0xff]  ;;  %v721_v14 = vld [vmem:[#allocation11 + $0x38] sm:$0xff] }
  0xe2   : > { %2216 = vmatpush3.bf16.msra.mxu0 %v2213_v22  ;;  %v2273_v11 = vpack.c.bf16 %v719_v10, %v718_v9  ;;  %v720_v13 = vld [vmem:[#allocation11 + $0x30] sm:$0xff]  ;;  %v722_v16 = vld [vmem:[#allocation11 + $0x40] sm:$0xff]  ;;  %v723_v17 = vld [vmem:[#allocation11 + $0x48] sm:$0xff]  ;;  %p2694_p4 = por %p2693_p10, %p2692_p9 }
  0xe3   : > { %2248 = vmatpush3.bf16.msra.mxu1 %v2245_v23  ;;  %2218 = vmatprep.subr.bf16.mxu0 %v2217_v30  ;;  %v2277_v15 = vpack.c.bf16 %v721_v14, %v720_v13  ;;  %v2281_v18 = vpack.c.bf16 %v723_v17, %v722_v16  ;;  %v724_v19 = vld [vmem:[#allocation11 + $0x50] sm:$0xff]  ;;  %v725_v20 = vld [vmem:[#allocation11 + $0x58] sm:$0xff]  ;;  %v726_v22 = vld [vmem:[#allocation11 + $0x60] sm:$0xff] }
  0xe4   : > { %2250 = vmatprep.subr.bf16.mxu1 %v2249_v31  ;;  %v2285_v21 = vpack.c.bf16 %v725_v20, %v724_v19  ;;  %v727_v23 = vld [vmem:[#allocation11 + $0x68] sm:$0xff]  ;;  %v728_v29 = vld [vmem:[#allocation11 + $0x70] sm:$0xff]  ;;  %v1916_v10 = vld [vmem:[%s3442_s28] ss:$0 sm:$0xff]  ;;  %p2695_p5 = pnand %p2694_p4, %p2688_p6 }
  0xe5   : > { %v2289_v28 = vpack.c.bf16 %v727_v23, %v726_v22  ;;  %v515_v41 = vld [vmem:[%s446_s11 + $0x8] sm:$0xff]  ;;  %s1650_s11 = scalar_lea.sflag [#allocation4], %s3122_s19 }
  0xe6   : > { %2220 = vmatpush3.bf16.msra.mxu0 %v2217_v30  ;;  %v729_v30 = vld [vmem:[#allocation11 + $0x78] sm:$0xff] }
  0xe7   : > { %2252 = vmatpush3.bf16.msra.mxu1 %v2249_v31  ;;  %2222 = vmatprep.subr.bf16.mxu0 %v2221_v36  ;;  %v2293_v35 = vpack.c.bf16 %v729_v30, %v728_v29 }
  0xe8   : > { %2254 = vmatprep.subr.bf16.mxu1 %v2253_v37 }
  0xea   : > { %2224 = vmatpush3.bf16.msra.mxu0 %v2221_v36 }
  0xeb   : > { %2256 = vmatpush3.bf16.msra.mxu1 %v2253_v37  ;;  %2226 = vmatprep.subr.bf16.mxu0 %v2225_v42 }
  0xec   : > { %2258 = vmatprep.subr.bf16.mxu1 %v2257_v43 }
  0xee   : > { %2228 = vmatpush3.bf16.msra.mxu0 %v2225_v42 }
  0xef   : > { %2260 = vmatpush3.bf16.msra.mxu1 %v2257_v43  ;;  %2230 = vmatprep.subr.bf16.mxu0 %v2229_v48 }
  0xf0   : > { %2262 = vmatprep.subr.bf16.mxu1 %v2261_v49 }
  0xf2   : > { %2232 = vmatpush3.bf16.msra.mxu0 %v2229_v48 }
  0xf3   : > { %2264 = vmatpush3.bf16.msra.mxu1 %v2261_v49  ;;  %2266 = vmatprep.subr.bf16.mxu0 %v2265_v6 }
  0xf5   : > { %2073 = vmatmul.mubr.f32.vlgmr.msra.gmra.mrb[0].mxu0 %v511_v50 }
  0xf6   : > { %2108 = vmatmul.mubr.f32.vlgmr.msra.gmra.mrb[0].mxu1 %v513_v51  ;;  %2268 = vmatpush3.bf16.msra.mxu0 %v2265_v6 }
  0xf7   : > { %2270 = vmatprep.subr.bf16.mxu0 %v2269_v8  ;;  %2142 = vmatprep.mubr.f32.mxu0 %v514_v12 }
  0xfa   : > { %2272 = vmatpush3.bf16.msra.mxu0 %v2269_v8 }
  0xfb   : > { %2274 = vmatprep.subr.bf16.mxu0 %v2273_v11 }
  0xfe   : > { %2276 = vmatpush3.bf16.msra.mxu0 %v2273_v11 }
  0xff   : > { %2278 = vmatprep.subr.bf16.mxu0 %v2277_v15 }
 0x102   : > { %2280 = vmatpush3.bf16.msra.mxu0 %v2277_v15 }
 0x103   : > { %2282 = vmatprep.subr.bf16.mxu0 %v2281_v18 }
 0x106   : > { %2284 = vmatpush3.bf16.msra.mxu0 %v2281_v18 }
 0x107   : > { %2286 = vmatprep.subr.bf16.mxu0 %v2285_v21 }
 0x10a   : > { %2288 = vmatpush3.bf16.msra.mxu0 %v2285_v21 }
 0x10b   : > { %2290 = vmatprep.subr.bf16.mxu0 %v2289_v28 }
 0x10e   : > { %2292 = vmatpush3.bf16.msra.mxu0 %v2289_v28 }
 0x10f   : > { %2294 = vmatprep.subr.bf16.mxu0 %v2293_v35 }
 0x112   : > { %2296 = vmatpush3.bf16.msra.mxu0 %v2293_v35 }
 0x115   : > { %2143 = vmatmul.mubr.f32.vlgmr.msra.gmra.mrb[2].mxu0 %v515_v41 }
 0x1c8   : > { %v2074_v54 = vpop.f32.mrb[0].mxu0 }
 0x1c9   : > { %v2109_v55 = vpop.f32.mrb[0].mxu1  ;;  %v605_v56 = vpop.f32.mrb[1].mxu0  ;;  %v611_v57 = vadd.f32 %v2074_v54, %v1914_v52 }
 0x1ca   : > { %v711_v58 = vadd.f32 %v2109_v55, %v1915_v53  ;;  %v606_v59 = vadd.f32 %v1914_v52, %v605_v56  ;;  %v705_v60 = vpop.f32.mrb[1].mxu1 }
 0x1cb   : > { %v706_v61 = vadd.f32 %v1915_v53, %v705_v60  ;;  %v615_v2 = vmul.f32 0.17677669, %v611_v57 }
 0x1cc   : > { %v614_v62 = vmul.f32 0.17677669, %v606_v59 }
 0x1cd   : > { %v2449_v0 = vpack.i.bf16 %v711_v58, %v706_v61  ;;  %v2297_v1 = vpack.c.bf16 %v711_v58, %v706_v61 }
 0x1ce   : > { %900 = vrot.lane.b32.xlu1 %v614_v62, %s2777_s13  ;;  %2149 = vmatprep.mubr.msk.f32.mxu1 %vm812_vm0, %v614_v62 }
 0x1cf   : > { %2450 = vrot.lane.b32.xlu0 %v2449_v0, %s2777_s13  ;;  %2299 = vmatprep.subr.msk.bf16.mxu1 %vm3164_vm1, %v2297_v1 }
 0x1d0   : > { %2302 = vmatpush3.bf16.xpose.msk.msra.mxu1 %vm3164_vm1, %v2297_v1 }
 0x1d2   : > { %902 = vrot.lane.b32.xlu1 %v615_v2, %s2777_s13 }
 0x1d3   : > { %2455 = vrot.lane.b32.xlu0 %v2449_v0, %s2778_s18 }
 0x1d6   : > { %991 = vrot.lane.b32.xlu1 %v614_v62, %s2778_s18 }
 0x1d7   : > { %2460 = vrot.lane.b32.xlu0 %v2449_v0, %s2779_s3  ;;  %2150 = vmatmul.mubr.msk.f32.vlgmr.msra.gmra.mrb[2].mxu1 %vm812_vm0, %v615_v2 }
 0x1da   : > { %1082 = vrot.lane.b32.xlu1 %v614_v62, %s2779_s3 }
 0x1db   : > { %993 = vrot.lane.b32.xlu0 %v615_v2, %s2778_s18 }
 0x1df   : > { %1084 = vrot.lane.b32.xlu0 %v615_v2, %s2779_s3 }
 0x1e8   : > { %v2144_v9 = vpop.f32.mrb[2].mxu0 }
 0x1e9   : > { %v803_v11 = vpop.f32.mrb[3].mxu0  ;;  %v809_v12 = vadd.f32 %v2144_v9, %v1916_v10 }
 0x1ea   : > { %v804_v13 = vadd.f32 %v1916_v10, %v803_v11 }
 0x1ec   : > { %v2321_v14 = vpack.c.bf16 %v809_v12, %v804_v13  ;;  %v2469_v15 = vpack.i.bf16 %v809_v12, %v804_v13 }
 0x1ee   : > { %2322 = vmatprep.subr.bf16.mxu0 %v2321_v14 }
 0x1ef   : > { %2324 = vmatpush3.bf16.msra.mxu0 %v2321_v14 }
 0x240   : > { %v901_v24 = vpop.permute.xlu1 %900 }
 0x241   : > { %v2451_v25 = vpop.permute.xlu0 %2450  ;;  %2156 = vmatprep.mubr.msk.f32.mxu1 %vm812_vm0, %v901_v24 }
 0x242   : > { %v2453_v26 = vunpack.i.h.bf16 %v2451_v25  ;;  %v2452_v27 = vunpack.i.l.bf16 %v2451_v25 }
 0x244   : > { %v2303_v31 = vpack.c.bf16 %v2453_v26, %v2452_v27  ;;  %v903_v37 = vpop.permute.xlu1 %902 }
 0x245   : > { %v2456_v32 = vpop.permute.xlu0 %2455 }
 0x246   : > { %v2458_v33 = vunpack.i.h.bf16 %v2456_v32  ;;  %v2457_v34 = vunpack.i.l.bf16 %v2456_v32  ;;  %2305 = vmatprep.subr.msk.bf16.mxu1 %vm3164_vm1, %v2303_v31 }
 0x247   : > { %2308 = vmatpush3.bf16.xpose.msk.msra.mxu1 %vm3164_vm1, %v2303_v31 }
 0x248   : > { %v2309_v36 = vpack.c.bf16 %v2458_v33, %v2457_v34  ;;  %v992_v43 = vpop.permute.xlu1 %991 }
 0x249   : > { %v2461_v38 = vpop.permute.xlu0 %2460 }
 0x24a   : > { %v2463_v39 = vunpack.i.h.bf16 %v2461_v38  ;;  %v2462_v40 = vunpack.i.l.bf16 %v2461_v38  ;;  %2311 = vmatprep.subr.msk.bf16.mxu1 %vm3164_vm1, %v2309_v36 }
 0x24c   : > { %v2315_v42 = vpack.c.bf16 %v2463_v39, %v2462_v40  ;;  %v1083_v45 = vpop.permute.xlu1 %1082 }
 0x24d   : > { %v994_v44 = vpop.permute.xlu0 %993 }
 0x24e   : > { %2157 = vmatmul.mubr.msk.f32.vlgmr.msra.gmra.mrb[4].mxu1 %vm812_vm0, %v903_v37 }
 0x24f   : > { %2314 = vmatpush3.bf16.xpose.msk.msra.mxu1 %vm3164_vm1, %v2309_v36  ;;  %2163 = vmatprep.mubr.msk.f32.mxu1 %vm812_vm0, %v992_v43 }
 0x250   : > { %2317 = vmatprep.subr.msk.bf16.mxu1 %vm3164_vm1, %v2315_v42 }
 0x251   : > { %v1085_v46 = vpop.permute.xlu0 %1084 }
 0x256   : > { %2164 = vmatmul.mubr.msk.f32.vlgmr.msra.gmra.mrb[6].mxu1 %vm812_vm0, %v994_v44 }
 0x257   : > { %2320 = vmatpush3.bf16.xpose.msk.msra.mxu1 %vm3164_vm1, %v2315_v42  ;;  %2170 = vmatprep.mubr.msk.f32.mxu1 %vm812_vm0, %v1083_v45 }
 0x25e   : > { %2171 = vmatmul.mubr.msk.f32.vlgmr.msra.gmra.mrb[8].mxu1 %vm812_vm0, %v1085_v46 }
 0x2aa   : > { %v2151_v47 = vpop.f32.mrb[2].mxu1 }
 0x2ab   : > { %v891_v48 = vpop.f32.mrb[3].mxu1  ;;  %v1177_v49 = vsel %vm1173_vm2, %v2151_v47, -inf }
 0x2ac   : > { %1178 = vmax.xlane.f32.xlu0 %v1177_v49  ;;  %v1174_v50 = vsel %vm1173_vm2, %v891_v48, -inf }
 0x2ad   : > { %1175 = vmax.xlane.f32.xlu1 %v1174_v50 }
 0x321   : > { %v2158_v51 = vpop.f32.mrb[4].mxu1 }
 0x322   : > { %v982_v52 = vpop.f32.mrb[5].mxu1  ;;  %v1183_v53 = vsel %vm1173_vm2, %v2158_v51, -inf }
 0x323   : > { %1184 = vmax.xlane.f32.xlu1 %v1183_v53  ;;  %v1180_v54 = vsel %vm1173_vm2, %v982_v52, -inf }
 0x324   : > { %1181 = vmax.xlane.f32.xlu0 %v1180_v54 }
 0x329   : > { %v2165_v55 = vpop.f32.mrb[6].mxu1 }
 0x32a   : > { %v1073_v56 = vpop.f32.mrb[7].mxu1  ;;  %v1189_v57 = vsel %vm1173_vm2, %v2165_v55, -inf }
 0x32b   : > { %1190 = vmax.xlane.f32.xlu1 %v1189_v57  ;;  %v1186_v58 = vsel %vm1173_vm2, %v1073_v56, -inf }
 0x32c   : > { %1187 = vmax.xlane.f32.xlu0 %v1186_v58 }
 0x331   : > { %v2172_v59 = vpop.f32.mrb[8].mxu1 }
 0x332   : > { %v1164_v60 = vpop.f32.mrb[9].mxu1  ;;  %v1195_v61 = vsel %vm1173_vm2, %v2172_v59, -inf }
 0x333   : > { %1196 = vmax.xlane.f32.xlu1 %v1195_v61  ;;  %v1192_v62 = vsel %vm1173_vm2, %v1164_v60, -inf }
 0x334   : > { %1193 = vmax.xlane.f32.xlu0 %v1192_v62 }
 0x339   : > { %v1179_v63 = vpop.xlane.xlu0 %1178 }
 0x33a   : > { %v1199_v0 = vsub.f32 %v2151_v47, %v1179_v63  ;;  %v1176_v1 = vpop.xlane.xlu1 %1175 }
 0x33b   : > { %v1198_v2 = vsub.f32 %v891_v48, %v1176_v1 }
 0x33c   : > { %v1208_v3 = vmul.f32 1.442695, %v1199_v0 }
 0x33d   : > { %v1206_v4 = vmul.f32 1.442695, %v1198_v2 }
 0x33e   : > { %2479 = vpow2.f32 %v1208_v3 }
 0x33f   : > { %2481 = vpow2.f32 %v1206_v4 }
 0x348   : > { %v3213_v5 = vpop.eup %2479 }
 0x349   : > { %v3215_v6 = vpop.eup %2481  ;;  %v1225_v7 = vsel %vm1173_vm2, %v3213_v5, 0.0 }
 0x34a   : > { %1226 = vadd.xlane.f32.xlu1 %v1225_v7  ;;  %v1222_v8 = vsel %vm1173_vm2, %v3215_v6, 0.0 }
 0x34b   : > { %1223 = vadd.xlane.f32.xlu0 %v1222_v8 }
 0x3b0   : > { %v1185_v16 = vpop.xlane.xlu1 %1184 }
 0x3b1   : > { %v1201_v17 = vsub.f32 %v2158_v51, %v1185_v16  ;;  %v1182_v18 = vpop.xlane.xlu0 %1181 }
 0x3b2   : > { %v1200_v19 = vsub.f32 %v982_v52, %v1182_v18 }
 0x3b3   : > { %v1212_v20 = vmul.f32 1.442695, %v1201_v17 }
 0x3b4   : > { %v1210_v21 = vmul.f32 1.442695, %v1200_v19 }
 0x3b5   : > { %2483 = vpow2.f32 %v1212_v20 }
 0x3b6   : > { %2485 = vpow2.f32 %v1210_v21 }
 0x3b8   : > { %v1191_v22 = vpop.xlane.xlu1 %1190 }
 0x3b9   : > { %v1203_v23 = vsub.f32 %v2165_v55, %v1191_v22  ;;  %v1188_v24 = vpop.xlane.xlu0 %1187 }
 0x3ba   : > { %v1202_v25 = vsub.f32 %v1073_v56, %v1188_v24 }
 0x3bb   : > { %v1216_v26 = vmul.f32 1.442695, %v1203_v23 }
 0x3bc   : > { %v1214_v27 = vmul.f32 1.442695, %v1202_v25 }
 0x3bd   : > { %2487 = vpow2.f32 %v1216_v26 }
 0x3be   : > { %2489 = vpow2.f32 %v1214_v27 }
 0x3bf   : > { %v2484_v28 = vpop.eup %2483 }
 0x3c0   : > { %v2486_v29 = vpop.eup %2485  ;;  %v1197_v30 = vpop.xlane.xlu1 %1196  ;;  %v1231_v31 = vsel %vm1173_vm2, %v2484_v28, 0.0 }
 0x3c1   : > { %v1205_v32 = vsub.f32 %v2172_v59, %v1197_v30  ;;  %1232 = vadd.xlane.f32.xlu1 %v1231_v31  ;;  %v1194_v33 = vpop.xlane.xlu0 %1193  ;;  %v1228_v34 = vsel %vm1173_vm2, %v2486_v29, 0.0 }
 0x3c2   : > { %v1204_v35 = vsub.f32 %v1164_v60, %v1194_v33  ;;  %1229 = vadd.xlane.f32.xlu0 %v1228_v34 }
 0x3c3   : > { %v1220_v36 = vmul.f32 1.442695, %v1205_v32 }
 0x3c4   : > { %v1218_v37 = vmul.f32 1.442695, %v1204_v35 }
 0x3c5   : > { %2491 = vpow2.f32 %v1220_v36 }
 0x3c6   : > { %2493 = vpow2.f32 %v1218_v37 }
 0x3c7   : > { %v2488_v38 = vpop.eup %2487 }
 0x3c8   : > { %v2490_v39 = vpop.eup %2489  ;;  %v1237_v40 = vsel %vm1173_vm2, %v2488_v38, 0.0 }
 0x3c9   : > { %1238 = vadd.xlane.f32.xlu1 %v1237_v40  ;;  %v1234_v41 = vsel %vm1173_vm2, %v2490_v39, 0.0 }
 0x3ca   : > { %1235 = vadd.xlane.f32.xlu0 %v1234_v41 }
 0x3cf   : > { %v3228_v42 = vpop.eup %2491 }
 0x3d0   : > { %v3230_v43 = vpop.eup %2493  ;;  %v1243_v44 = vsel %vm1173_vm2, %v3228_v42, 0.0 }
 0x3d1   : > { %1244 = vadd.xlane.f32.xlu1 %v1243_v44  ;;  %v1240_v45 = vsel %vm1173_vm2, %v3230_v43, 0.0 }
 0x3d2   : > { %1241 = vadd.xlane.f32.xlu0 %v1240_v45 }
 0x3d7   : > { %v1227_v46 = vpop.xlane.xlu1 %1226 }
 0x3d8   : > { %2495 = vrcp.f32 %v1227_v46  ;;  %v1224_v47 = vpop.xlane.xlu0 %1223 }
 0x3d9   : > { %2497 = vrcp.f32 %v1224_v47 }
 0x3e2   : > { %v2496_v48 = vpop.eup %2495  ;;  %2470 = vrot.lane.b32.xlu1 %v2469_v15, %s2778_s18 }
 0x3e3   : > { %v2498_v49 = vpop.eup %2497  ;;  %v1255_v50 = vmul.f32 %v2496_v48, %v3213_v5 }
 0x3e4   : > { %v1254_v51 = vmul.f32 %v2498_v49, %v3215_v6 }
 0x3e5   : > { %1642 = vst.msk [vmem:[%s3240_s7 + $0x8] sm:$0xff] %vm1173_vm2, %v1255_v50 }
 0x3e6   : > { %2177 = vmatprep.mubr.msk.f32.mxu0 %vm1173_vm2, %v1254_v51  ;;  %1641 = vst.msk [vmem:[%s3240_s7] sm:$0xff] %vm1173_vm2, %v1254_v51  ;;  %2475 = vrot.lane.b32.xlu1 %v2469_v15, %s2779_s3 }
 0x3e7   : > { %2178 = vmatmul.mubr.msk.f32.vlgmr.msra.gmra.mrb[4].mxu0 %vm1173_vm2, %v1255_v50 }
 0x3e8   : > { %2465 = vrot.lane.b32.xlu0 %v2469_v15, %s2777_s13 }
 0x44e   : > { %v1233_v52 = vpop.xlane.xlu1 %1232 }
 0x44f   : > { %2499 = vrcp.f32 %v1233_v52  ;;  %v1230_v53 = vpop.xlane.xlu0 %1229 }
 0x450   : > { %2501 = vrcp.f32 %v1230_v53 }
 0x456   : > { %v1239_v54 = vpop.xlane.xlu1 %1238 }
 0x457   : > { %2503 = vrcp.f32 %v1239_v54  ;;  %v1236_v55 = vpop.xlane.xlu0 %1235 }
 0x458   : > { %2505 = vrcp.f32 %v1236_v55 }
 0x459   : > { %v2500_v56 = vpop.eup %2499 }
 0x45a   : > { %v2502_v57 = vpop.eup %2501  ;;  %v1257_v58 = vmul.f32 %v2500_v56, %v2484_v28 }
 0x45b   : > { %v1256_v59 = vmul.f32 %v2502_v57, %v2486_v29 }
 0x45c   : > { %1644 = vst.msk [vmem:[%s3240_s7 + $0x18] sm:$0xff] %vm1173_vm2, %v1257_v58 }
 0x45d   : > { %2184 = vmatprep.mubr.msk.f32.mxu1 %vm1173_vm2, %v1256_v59  ;;  %1643 = vst.msk [vmem:[%s3240_s7 + $0x10] sm:$0xff] %vm1173_vm2, %v1256_v59 }
 0x45e   : > { %v1245_v60 = vpop.xlane.xlu1 %1244 }
 0x45f   : > { %2507 = vrcp.f32 %v1245_v60  ;;  %v1242_v61 = vpop.xlane.xlu0 %1241 }
 0x460   : > { %2509 = vrcp.f32 %v1242_v61 }
 0x461   : > { %v2504_v62 = vpop.eup %2503 }
 0x462   : > { %v2506_v63 = vpop.eup %2505  ;;  %v1259_v0 = vmul.f32 %v2504_v62, %v2488_v38  ;;  %v2471_v1 = vpop.permute.xlu1 %2470 }
 0x463   : > { %v2473_v2 = vunpack.i.h.bf16 %v2471_v1  ;;  %v2472_v3 = vunpack.i.l.bf16 %v2471_v1  ;;  %v2466_v4 = vpop.permute.xlu0 %2465  ;;  %v1258_v5 = vmul.f32 %v2506_v63, %v2490_v39 }
 0x464   : > { %1646 = vst.msk [vmem:[%s3240_s7 + $0x28] sm:$0xff] %vm1173_vm2, %v1259_v0  ;;  %v2468_v6 = vunpack.i.h.bf16 %v2466_v4  ;;  %v2467_v7 = vunpack.i.l.bf16 %v2466_v4 }
 0x465   : > { %v2329_v8 = vpack.c.bf16 %v2473_v2, %v2472_v3  ;;  %2191 = vmatprep.mubr.msk.f32.mxu0 %vm1173_vm2, %v1258_v5  ;;  %1645 = vst.msk [vmem:[%s3240_s7 + $0x20] sm:$0xff] %vm1173_vm2, %v1258_v5 }
 0x466   : > { %v2325_v9 = vpack.c.bf16 %v2468_v6, %v2467_v7  ;;  %v2476_v10 = vpop.permute.xlu1 %2475 }
 0x467   : > { %v2478_v11 = vunpack.i.h.bf16 %v2476_v10  ;;  %v2477_v12 = vunpack.i.l.bf16 %v2476_v10  ;;  %2330 = vmatprep.subr.bf16.mxu0 %v2329_v8 }
 0x468   : > { %2326 = vmatprep.subr.bf16.mxu1 %v2325_v9  ;;  %2332 = vmatpush3.bf16.msra.mxu0 %v2329_v8 }
 0x469   : > { %v2508_v13 = vpop.eup %2507  ;;  %v2333_v14 = vpack.c.bf16 %v2478_v11, %v2477_v12  ;;  %2328 = vmatpush3.bf16.msra.mxu1 %v2325_v9 }
 0x46a   : > { %v2510_v15 = vpop.eup %2509  ;;  %v1261_v16 = vmul.f32 %v2508_v13, %v3228_v42 }
 0x46b   : > { %2192 = vmatmul.mubr.msk.f32.vlgmr.msra.gmra.mrb[6].mxu0 %vm1173_vm2, %v1259_v0  ;;  %2334 = vmatprep.subr.bf16.mxu1 %v2333_v14  ;;  %v1260_v17 = vmul.f32 %v2510_v15, %v3230_v43 }
 0x46c   : > { %1648 = vst.msk [vmem:[%s3240_s7 + $0x38] sm:$0xff] %vm1173_vm2, %v1261_v16  ;;  %2185 = vmatmul.mubr.msk.f32.vlgmr.msra.gmra.mrb[10].mxu1 %vm1173_vm2, %v1257_v58 }
 0x46d   : > { %2336 = vmatpush3.bf16.msra.mxu1 %v2333_v14  ;;  %2198 = vmatprep.mubr.msk.f32.mxu1 %vm1173_vm2, %v1260_v17  ;;  %1647 = vst.msk [vmem:[%s3240_s7 + $0x30] sm:$0xff] %vm1173_vm2, %v1260_v17 }
 0x470   : > { %2199 = vmatmul.mubr.msk.f32.vlgmr.msra.gmra.mrb[12].mxu1 %vm1173_vm2, %v1261_v16 }
 0x4ba   : > { %v2179_v18 = vpop.f32.mrb[4].mxu0 }
 0x4bb   : > { %1344 = vst.msk [vmem:[%s3271_s8 + $0x8] sm:$0xff] %vm812_vm0, %v2179_v18  ;;  %v1334_v19 = vpop.f32.mrb[5].mxu0 }
 0x4bc   : > { %1343 = vst.msk [vmem:[%s3271_s8] sm:$0xff] %vm812_vm0, %v1334_v19 }
 0x53e   : > { %v2193_v20 = vpop.f32.mrb[6].mxu0 }
 0x53f   : > { %v2186_v21 = vpop.f32.mrb[10].mxu1  ;;  %v1523_v22 = vpop.f32.mrb[7].mxu0 }
 0x540   : > { %1438 = vrot.lane.b32.xlu1 %v2186_v21, %s2779_s3  ;;  %v1425_v23 = vpop.f32.mrb[11].mxu1 }
 0x541   : > { %1436 = vrot.lane.b32.xlu0 %v1425_v23, %s2779_s3 }
 0x543   : > { %v2200_v24 = vpop.f32.mrb[12].mxu1 }
 0x544   : > { %1536 = vrot.lane.b32.xlu1 %v2193_v20, %s2778_s18  ;;  %v1621_v25 = vpop.f32.mrb[13].mxu1 }
 0x545   : > { %1534 = vrot.lane.b32.xlu0 %v1523_v22, %s2778_s18 }
 0x548   : > { %1634 = vrot.lane.b32.xlu1 %v2200_v24, %s2777_s13 }
 0x549   : > { %1632 = vrot.lane.b32.xlu0 %v1621_v25, %s2777_s13 }
 0x5b2   : > { %v1439_v26 = vpop.permute.xlu1 %1438 }
 0x5b3   : > { %1444 = vst.msk [vmem:[%s3271_s8 + $0x8] sm:$0xff] %vm1442_vm3, %v1439_v26  ;;  %v1437_v27 = vpop.permute.xlu0 %1436 }
 0x5b4   : > { %1443 = vst.msk [vmem:[%s3271_s8] sm:$0xff] %vm1442_vm3, %v1437_v27 }
 0x5b6   : > { %v1537_v28 = vpop.permute.xlu1 %1536 }
 0x5b7   : > { %1542 = vst.msk [vmem:[%s3271_s8 + $0x8] sm:$0xff] %vm1540_vm4, %v1537_v28  ;;  %v1535_v29 = vpop.permute.xlu0 %1534 }
 0x5b8   : > { %1541 = vst.msk [vmem:[%s3271_s8] sm:$0xff] %vm1540_vm4, %v1535_v29 }
 0x5ba   : > { %v1635_v30 = vpop.permute.xlu1 %1634 }
 0x5bb   : > { %1640 = vst.msk [vmem:[%s3271_s8 + $0x8] sm:$0xff] %vm1638_vm5, %v1635_v30  ;;  %v1633_v31 = vpop.permute.xlu0 %1632 }
 0x5bc   : > { %1639 = vst.msk [vmem:[%s3271_s8] sm:$0xff] %vm1638_vm5, %v1633_v31 }
 0x5bd   : > { %2698 = shalt.err (!%p2695_p5)
}
 0x5be   : > { %s2699_s26 = scalar_lea.hbm %s3294_s22, 256  ;;  %s2703_s18 = scalar_lea.hbm %s3444_s23, 512 }
 0x5bf   : > { %p2700_p8 = scmp.ne.s32.totalorder %s3294_s22, %s2699_s26  ;;  %p2704_p11 = scmp.lt.u32.totalorder %s3294_s22, %s3444_s23 }
 0x5c0   : > { %p2705_p13 = scmp.lt.u32.totalorder %s2703_s18, %s2699_s26  ;;  %p2707_p7 = scmp.lt.u32.totalorder %s2699_s26, %s3294_s22 }
 0x5c1   : > { %p2701_p1 = pnand %p2700_p8, %p3445_p12 }
 0x5c2   : > { %p2706_p3 = por %p2705_p13, %p2704_p11 }
 0x5c3   : > { %p2702_p0 = pneg %p2701_p1 }
 0x5c4   : > { %p2708_p2 = por %p2707_p7, %p2706_p3 }
 0x5c6   : > { %p2709_p6 = pnand %p2708_p2, %p2702_p0 }
 0x5c8   : > { %2712 = shalt.err (!%p2709_p6)
}
 0x5c9   : > { %s2781_s9 = smov 128   ;;  %s2782_s28 = smov 8  }
 0x5ca   : > { %2355 = dma.vmem_to_hbm [thread:$0]  (%p3445_p12), %s3296_s21, 256, %s3294_s22, %s1650_s11, %s2781_s9, %s2781_s9, %s2782_s28  }
 0x5cb   : > { %s1655_s12 = scalar_lea.sflag [#allocation15], %s3122_s19 }
 0x5cc   : > { %s3446_s27 = sld [smem:[#allocation36_spill]]  ;;  %s1700_s29 = sshll.u32 %s3240_s7, 4  ;;  %s1701_s29 = int_to_ptr.vmem [resolvable:$true] %s1700_s29 }
 0x5cd   : > { %s2783_s30 = smov 256   ;;  %s2784_s19 = smov 512  }
 0x5ce   : > { %2356 = sst [smem:[#allocation17]] (%p3445_p12), %s2783_s30  ;;  %s2785_s17 = smov 2  }
 0x5cf   : > { %2357 = sst [smem:[#allocation17 + $0x1]] (%p3445_p12), %s2784_s19  ;;  %s2786_s21 = smov 128  }
 0x5d0   : > { %2358 = sst [smem:[#allocation17 + $0x2]] (%p3445_p12), %s2785_s17  ;;  %s2787_s22 = smov 8  }
 0x5d1   : > { %2359 = sst [smem:[#allocation17 + $0x3]] (%p3445_p12), %s2786_s21  ;;  %s2789_s7 = smov 0  }
 0x5d2   : > { %s1683_s24 = scalar_lea.hbm %s3446_s27, %s1952_s20  ;;  %2360 = sst [smem:[#allocation17 + $0x4]] (%p3445_p12), %s2786_s21 }
 0x5d3   : > { %2361 = sst [smem:[#allocation17 + $0x5]] (%p3445_p12), %s2787_s22  ;;  %s2788_s20 = smov [#allocation16]  }
 0x5d4   : > { %2362 = dma.general (%p3445_p12), %s1701_s29, 1024, %s1683_s24, %s1655_s12, %s2788_s20, [#allocation17], %s2789_s7, 0  }
 0x5d5 PF: > { %s3447_s11 = sld [smem:[#allocation24_spill]]  ;;  %s3448_s25 = sld [smem:[#allocation29_spill]] }
 0x5d6   : > { %s3449_s26 = sld [smem:[#allocation25_spill]] }
 0x5db   : > { %s1728_s10 = sand.u32 1, %s3447_s11   ;;  %p3450_p9 = scmp.ne.s32.totalorder %s3448_s25, 0 }
 0x5dc   : > { %p3451_p10 = scmp.ge.s32.totalorder %s3449_s26, 2  ;;  %s1729_s13 = scalar_lea.sflag [#allocation4], %s1728_s10 }
 0x5de   : > { %p2386_p4 = pnand %p3451_p10, %p3450_p9 }
 0x5e0   : > { %2746 = dma.done.wait (!%p2386_p4), %s1729_s13, 256  }
 0x5e1   : > { %2748 = vsyncadd (!%p2386_p4), %s1729_s13, 4294967040  ;;  %s1738_s18 = scalar_lea.sflag [#allocation15], %s1728_s10 }
 0x5e2   : > { %2750 = dma.done.wait (!%p2386_p4), %s1738_s18, 1024  }
 0x5e3   : > { %2752 = vsyncadd (!%p2386_p4), %s1738_s18, 4294966272  ;;  %s3452_s16 = sld [smem:[#allocation26_spill]]  ;;  %s3453_s3 = sld [smem:[#allocation27_spill]] }
 0x5e4   : > { %s3454_s13 = smov %s2759_s14  ;;  %s3455_s14 = smov %s2763_s15 }
 0x5e9   : > { %p32_p12 = scmp.ge.s32.totalorder %s3452_s16, 4   ;;  %s3456_s15 = smov %s3453_s3 }
 0x5eb   :  { %34 = sbr.rel (!%p32_p12) target bundleno = 19 (0x13), region = 159 }
 0x5f2   :  { %1743 = vsyncpa [#allocation3], 1 }
 0x5f3   :  { %1745 = vsyncpa [#allocation3 + $0x1], 1 }
 0x5f4   :  { %1746 = vsyncpa [#allocation6], 1 }
 0x5f5   :  { %1748 = vsyncpa [#allocation6 + $0x1], 1 }
 0x5f6   :  { %1749 = vsyncpa [#allocation9], 1 }
 0x5f7   :  { %1750 = vsyncpa [#allocation12], 1 }
 0x5f8   :  { %1751 = vsyncpa [#allocation4], 1 }
 0x5f9   :  { %1753 = vsyncpa [#allocation4 + $0x1], 1 }
 0x5fa   :  { %1754 = vsyncpa [#allocation15], 1 }
 0x5fb   :  { %1756 = vsyncpa [#allocation15 + $0x1], 1 }

</bundles_post_ra>
